<compile_context>
chip_gen: v5e
topology: v5e:2x2
jax: 0.10.0
libtpu: 0.0.40
codegen_flags: <defaults>
</compile_context>

<pallas_src>
import functools

import jax
import jax.numpy as jnp
from jax.experimental import pallas as pl
from jax.experimental.pallas import tpu as pltpu

EPS = 1e-6  # DINOv2 LayerNorm eps
F32 = jnp.float32
BF16 = jnp.bfloat16


# ----------------------------------------------------------------------------
# In-kernel / reference helpers
# ----------------------------------------------------------------------------
def _layernorm(x, g, b):
    mu = jnp.mean(x, axis=-1, keepdims=True)
    var = jnp.mean((x - mu) ** 2, axis=-1, keepdims=True)
    return (x - mu) * jax.lax.rsqrt(var + EPS) * g + b


# ----------------------------------------------------------------------------
# Fused ViT stack kernel: grid = (batch, depth)
# ----------------------------------------------------------------------------
def _vit_stack_kernel(patches_ref, tokadd_ref, wpatch_ref,
                      ln1g_ref, ln1b_ref,
                      wqkv_ref, bqkv_ref, wproj_ref, bproj_ref, ls1_ref,
                      ln2g_ref, ln2b_ref,
                      wfc1_ref, bfc1_ref, wfc2_ref, bfc2_ref, ls2_ref,
                      normg_ref, normb_ref,
                      out_ref, x_scr,
                      *, depth, n_last, num_heads, head_dim, seq_real):
    l = pl.program_id(1)                       # depth index ("arbitrary" axis)
    SP, D = x_scr.shape

    # ---- depth step 0: fused patch-embed matmul + [cls]/pos-embed assembly --
    @pl.when(l == 0)
    def _():
        pe = jnp.dot(patches_ref[0], wpatch_ref[...],
                     preferred_element_type=F32)
        # tokadd: row 0 = cls + pos[0]; rows 1..NP = pos + conv bias; pad = 0.
        x_scr[...] = pe + tokadd_ref[0]

    x = x_scr[...]                             # (SP, D) f32, VMEM-resident

    # -------------- attention: x + ls1 * Proj(MHSA(LN(x))) -------------------
    h = _layernorm(x, ln1g_ref[0], ln1b_ref[0]).astype(BF16)
    # One lane-dense (SP, D) x (D, 3D) matmul for all heads' Q, K, V.
    qkv = (jnp.dot(h, wqkv_ref[0], preferred_element_type=F32)
           + bqkv_ref[0]).astype(BF16)                           # (SP, 3D)

    if seq_real != SP:                         # additive mask on padded keys
        key_bias = jnp.where(
            jax.lax.broadcasted_iota(jnp.int32, (1, SP), 1) < seq_real,
            0.0, -1e30)
    else:
        key_bias = None

    o_heads = []
    for hd in range(num_heads):                # per-head (SP,SP) score blocks
        q_h = qkv[:, hd * head_dim:(hd + 1) * head_dim]          # scale folded
        k_h = qkv[:, D + hd * head_dim:D + (hd + 1) * head_dim]
        v_h = qkv[:, 2 * D + hd * head_dim:2 * D + (hd + 1) * head_dim]
        # q @ k^T without an explicit transpose (NT dot_general form).
        s = jax.lax.dot_general(q_h, k_h, (((1,), (1,)), ((), ())),
                                preferred_element_type=F32)      # (SP, SP)
        if key_bias is not None:
            s = s + key_bias
        mx = jnp.max(s, axis=-1, keepdims=True)
        p = jnp.exp(s - mx)
        p = p * pl.reciprocal(jnp.sum(p, axis=-1, keepdims=True), approx=True)
        o_heads.append(jnp.dot(p.astype(BF16), v_h,
                               preferred_element_type=F32).astype(BF16))
    o = jnp.concatenate(o_heads, axis=-1)                        # (SP, D) bf16
    proj = jnp.dot(o, wproj_ref[0], preferred_element_type=F32) + bproj_ref[0]
    x = x + ls1_ref[0] * proj

    # -------------- MLP: x + ls2 * FC2(GELU(FC1(LN(x)))) ---------------------
    h2 = _layernorm(x, ln2g_ref[0], ln2b_ref[0]).astype(BF16)
    m1 = jnp.dot(h2, wfc1_ref[0], preferred_element_type=F32) + bfc1_ref[0]
    # TODO(synk): PyTorch nn.GELU default is exact (erf); tanh approximation is
    #             used for guaranteed EUP lowering on all TPU generations.
    m1 = jax.nn.gelu(m1, approximate=True)
    m2 = (jnp.dot(m1.astype(BF16), wfc2_ref[0], preferred_element_type=F32)
          + bfc2_ref[0])
    x = x + ls2_ref[0] * m2

    x_scr[...] = x

    # Emit the final-normed output for the last n blocks. The output block
    # stays resident until its slot index changes, so earlier steps skip it.
    @pl.when(l >= depth - n_last)
    def _():
        out_ref[0, 0, :, :] = _layernorm(x, normg_ref[...], normb_ref[...])


# ----------------------------------------------------------------------------
# ModelWithIntermediateLayers.forward equivalent
# ----------------------------------------------------------------------------
def model_with_intermediate_layers(images, params, *, patch, num_heads,
                                   n_last_blocks):
    """images: NCHW float32. Returns tuple of (patch_tokens, class_token)."""
    B, C, Himg, Wimg = images.shape
    D = params["w_patch"].shape[1]
    head_dim = D // num_heads
    NP = (Himg // patch) * (Wimg // patch)
    S = 1 + NP
    SP = ((S + 7) // 8) * 8                    # sublane-pad the token count
    K = C * patch * patch
    depth = len(params["blocks"])
    HID = params["blocks"][0]["wfc1"].shape[1]

    # Patch extraction (conv -> matmul reformulation): pure layout glue.
    x = images.reshape(B, C, Himg // patch, patch, Wimg // patch, patch)
    x = x.transpose(0, 2, 4, 1, 3, 5).reshape(B, NP, K)
    # row 0 = [cls] slot (zeros contribute nothing through w_patch), tail = pad.
    patches = jnp.pad(x, ((0, 0), (1, SP - 1 - NP), (0, 0))).astype(BF16)

    # Additive token init: cls+pos for row 0, pos+conv-bias for patch rows.
    tokadd = jnp.zeros((1, SP, D), F32)
    tokadd = tokadd.at[:, 0, :].set(params["cls_token"][0, 0]
                                    + params["pos_embed"][0, 0])
    tokadd = tokadd.at[:, 1:S, :].set(params["pos_embed"][:, 1:]
                                      + params["b_patch"])

    # ---- per-block weight fusion (scale folded into wq/bq) + depth stacking -
    scale = head_dim ** -0.5

    def _fuse(bp):
        def heads_to_cols(w):                  # (H, D, HD) -> (D, H*HD)
            return jnp.transpose(w, (1, 0, 2)).reshape(D, D)

        def bias_to_row(b):                    # (H, 1, HD) -> (1, H*HD)
            return jnp.transpose(b, (1, 0, 2)).reshape(1, D)

        wqkv = jnp.concatenate([heads_to_cols(bp["wq"] * scale),
                                heads_to_cols(bp["wk"]),
                                heads_to_cols(bp["wv"])], axis=-1)  # (D, 3D)
        bqkv = jnp.concatenate([bias_to_row(bp["bq"] * scale),
                                bias_to_row(bp["bk"]),
                                bias_to_row(bp["bv"])], axis=-1)    # (1, 3D)
        wproj2 = bp["wproj"].reshape(D, D)     # (H*HD, D): rows match o concat
        return wqkv.astype(BF16), bqkv.astype(F32), wproj2

    fused = [_fuse(bp) for bp in params["blocks"]]
    stacked = {
        "ln1g": jnp.stack([bp["ln1g"] for bp in params["blocks"]]),
        "ln1b": jnp.stack([bp["ln1b"] for bp in params["blocks"]]),
        "wqkv": jnp.stack([f[0] for f in fused]),
        "bqkv": jnp.stack([f[1] for f in fused]),
        "wproj": jnp.stack([f[2] for f in fused]),
        "bproj": jnp.stack([bp["bproj"] for bp in params["blocks"]]),
        "ls1": jnp.stack([bp["ls1"] for bp in params["blocks"]]),
        "ln2g": jnp.stack([bp["ln2g"] for bp in params["blocks"]]),
        "ln2b": jnp.stack([bp["ln2b"] for bp in params["blocks"]]),
        "wfc1": jnp.stack([bp["wfc1"] for bp in params["blocks"]]),
        "bfc1": jnp.stack([bp["bfc1"] for bp in params["blocks"]]),
        "wfc2": jnp.stack([bp["wfc2"] for bp in params["blocks"]]),
        "bfc2": jnp.stack([bp["bfc2"] for bp in params["blocks"]]),
        "ls2": jnp.stack([bp["ls2"] for bp in params["blocks"]]),
    }

    def dspec(shape):          # one block's slice, streamed along depth
        zeros = (0,) * len(shape)
        return pl.BlockSpec((1,) + tuple(shape), lambda b, l: (l,) + zeros)

    def cspec(shape):          # grid-invariant (fetched once)
        zeros = (0,) * len(shape)
        return pl.BlockSpec(tuple(shape), lambda b, l: zeros)

    in_specs = [
        pl.BlockSpec((1, SP, K), lambda b, l: (b, 0, 0)),                 # patches
        cspec((1, SP, D)),                                                # tokadd
        cspec((K, D)),                                                    # w_patch
        dspec((1, D)), dspec((1, D)),                                     # ln1 g/b
        dspec((D, 3 * D)), dspec((1, 3 * D)),                             # wqkv/b
        dspec((D, D)), dspec((1, D)),                                     # wproj/b
        dspec((1, D)),                                                    # ls1
        dspec((1, D)), dspec((1, D)),                                     # ln2 g/b
        dspec((D, HID)), dspec((1, HID)),                                 # fc1
        dspec((HID, D)), dspec((1, D)),                                   # fc2
        dspec((1, D)),                                                    # ls2
        cspec((1, D)), cspec((1, D)),                                     # norm g/b
    ]

    skip = depth - n_last_blocks
    out_spec = pl.BlockSpec(
        (1, 1, SP, D), lambda b, l: (jnp.maximum(l - skip, 0), b, 0, 0))

    # Explicit VMEM budget: double-buffered streamed blocks + resident scratch
    # + in-kernel intermediates (qkv, per-head scores/probs, MLP hidden).
    def _bytes(a):
        return a.size * a.dtype.itemsize
    streamed = sum(_bytes(a) // depth for a in stacked.values())
    per_batch = _bytes(patches) // B
    invariant = sum(_bytes(a) for a in (tokadd, params["w_patch"],
                                        params["norm_g"], params["norm_b"]))
    out_block = SP * D * 4
    intermediates = (SP * 3 * D * 6                 # qkv f32 + bf16 copies
                     + num_heads * SP * SP * 8      # scores + probs (f32)
                     + SP * HID * 6                 # MLP hidden f32 + bf16
                     + 8 * SP * D * 4)              # misc (SP, D) temporaries
    vmem_limit = (2 * (streamed + per_batch + out_block) + invariant
                  + SP * D * 4 + intermediates + (4 << 20))
    vmem_limit = int(min(max(vmem_limit, 32 << 20), 64 << 20))

    kernel = functools.partial(
        _vit_stack_kernel, depth=depth, n_last=n_last_blocks,
        num_heads=num_heads, head_dim=head_dim, seq_real=S)

    out = pl.pallas_call(
        kernel,
        out_shape=jax.ShapeDtypeStruct((n_last_blocks, B, SP, D), F32),
        grid=(B, depth),
        in_specs=in_specs,
        out_specs=out_spec,
        scratch_shapes=[pltpu.VMEM((SP, D), F32)],
        compiler_params=pltpu.CompilerParams(
            dimension_semantics=("parallel", "arbitrary"),
            vmem_limit_bytes=vmem_limit),
    )(patches, tokadd, params["w_patch"],
      stacked["ln1g"], stacked["ln1b"],
      stacked["wqkv"], stacked["bqkv"], stacked["wproj"], stacked["bproj"],
      stacked["ls1"],
      stacked["ln2g"], stacked["ln2b"],
      stacked["wfc1"], stacked["bfc1"], stacked["wfc2"], stacked["bfc2"],
      stacked["ls2"],
      params["norm_g"], params["norm_b"])

    features = []
    for i in range(n_last_blocks):
        layer = out[i]                         # (B, SP, D)
        features.append((layer[:, 1:S], layer[:, 0]))
    return tuple(features)


# ----------------------------------------------------------------------------
# Parameter construction (deterministic, synthetic DINOv2-style ViT)
# ----------------------------------------------------------------------------
def init_params(key, *, in_chans, img_size, patch, dim, depth, num_heads,
                mlp_ratio):
    head_dim = dim // num_heads
    hid = dim * mlp_ratio
    kdim = in_chans * patch * patch
    seq = 1 + (img_size // patch) ** 2         # pos_embed built at correct S
    keys = iter(jax.random.split(key, 3 + 6 * depth))

    def nrm(shape, dtype=F32, scale=0.02):
        return (scale * jax.random.normal(next(keys), shape, F32)).astype(dtype)

    params = {
        "w_patch": nrm((kdim, dim), BF16),
        "b_patch": jnp.zeros((1, dim), F32),
        "cls_token": nrm((1, 1, dim)),
        "pos_embed": nrm((1, seq, dim)),
        "norm_g": jnp.ones((1, dim), F32),
        "norm_b": jnp.zeros((1, dim), F32),
        "blocks": [],
    }
    for _ in range(depth):
        params["blocks"].append({
            "ln1g": jnp.ones((1, dim), F32), "ln1b": jnp.zeros((1, dim), F32),
            "wq": nrm((num_heads, dim, head_dim), BF16),
            "bq": jnp.zeros((num_heads, 1, head_dim), F32),
            "wk": nrm((num_heads, dim, head_dim), BF16),
            "bk": jnp.zeros((num_heads, 1, head_dim), F32),
            "wv": nrm((num_heads, dim, head_dim), BF16),
            "bv": jnp.zeros((num_heads, 1, head_dim), F32),
            "wproj": nrm((num_heads, head_dim, dim), BF16),
            "bproj": jnp.zeros((1, dim), F32),
            "ls1": jnp.ones((1, dim), F32),    # LayerScale (DINOv2); 1.0 here
            "ln2g": jnp.ones((1, dim), F32), "ln2b": jnp.zeros((1, dim), F32),
            "wfc1": nrm((dim, hid), BF16), "bfc1": jnp.zeros((1, hid), F32),
            "wfc2": nrm((hid, dim), BF16), "bfc2": jnp.zeros((1, dim), F32),
            "ls2": jnp.ones((1, dim), F32),
        })
    return params


# ----------------------------------------------------------------------------
# Pure-JAX reference (same bf16 matmul operands) for a correctness check
# ----------------------------------------------------------------------------
def _reference_forward(images, params, *, patch, num_heads, n_last_blocks):
    B, C, Himg, Wimg = images.shape
    D = params["w_patch"].shape[1]
    HD = D // num_heads
    NP = (Himg // patch) * (Wimg // patch)
    K = C * patch * patch

    x = images.reshape(B, C, Himg // patch, patch, Wimg // patch, patch)
    x = x.transpose(0, 2, 4, 1, 3, 5).reshape(B, NP, K)
    pe = jnp.einsum("bnk,kd->bnd", x.astype(BF16), params["w_patch"],
                    preferred_element_type=F32) + params["b_patch"]
    cls = jnp.broadcast_to(params["cls_token"], (B, 1, D)).astype(F32)
    tok = jnp.concatenate([cls, pe], axis=1) + params["pos_embed"]

    depth = len(params["blocks"])
    outs = []
    for li, bp in enumerate(params["blocks"]):
        h = _layernorm(tok, bp["ln1g"], bp["ln1b"]).astype(BF16)
        q = jnp.einsum("bsd,hde->bhse", h, bp["wq"],
                       preferred_element_type=F32) + bp["bq"]
        k = jnp.einsum("bsd,hde->bhse", h, bp["wk"],
                       preferred_element_type=F32) + bp["bk"]
        v = jnp.einsum("bsd,hde->bhse", h, bp["wv"],
                       preferred_element_type=F32) + bp["bv"]
        s = jnp.einsum("bhqe,bhke->bhqk", q.astype(BF16), k.astype(BF16),
                       preferred_element_type=F32) * (HD ** -0.5)
        p = jax.nn.softmax(s, axis=-1)
        o = jnp.einsum("bhqk,bhke->bhqe", p.astype(BF16), v.astype(BF16),
                       preferred_element_type=F32)
        proj = jnp.einsum("bhse,hed->bsd", o.astype(BF16), bp["wproj"],
                          preferred_element_type=F32) + bp["bproj"]
        tok = tok + bp["ls1"] * proj
        h2 = _layernorm(tok, bp["ln2g"], bp["ln2b"]).astype(BF16)
        m1 = jnp.einsum("bsd,df->bsf", h2, bp["wfc1"],
                        preferred_element_type=F32) + bp["bfc1"]
        m1 = jax.nn.gelu(m1, approximate=True)
        m2 = jnp.einsum("bsf,fd->bsd", m1.astype(BF16), bp["wfc2"],
                        preferred_element_type=F32) + bp["bfc2"]
        tok = tok + bp["ls2"] * m2
        if li >= depth - n_last_blocks:
            outs.append(tok)

    feats = []
    for t in outs:
        nt = _layernorm(t, params["norm_g"], params["norm_b"])
        feats.append((nt[:, 1:], nt[:, 0]))
    return tuple(feats)


# ----------------------------------------------------------------------------
if __name__ == "__main__":
    B, C, Himg, Wimg = 2, 4, 16, 16
    PATCH = 8
    DIM = 128            # lane-dense hidden size (multiple of 128)
    DEPTH = 4
    NUM_HEADS = 2
    MLP_RATIO = 4
    N_LAST_BLOCKS = 2

    key = jax.random.PRNGKey(0)
    k_img, k_param = jax.random.split(key)

    params = init_params(k_param, in_chans=C, img_size=Himg, patch=PATCH,
                         dim=DIM, depth=DEPTH, num_heads=NUM_HEADS,
                         mlp_ratio=MLP_RATIO)
    images = jax.random.normal(k_img, (B, C, Himg, Wimg), dtype=F32)

    fwd = jax.jit(functools.partial(
        model_with_intermediate_layers, patch=PATCH, num_heads=NUM_HEADS,
        n_last_blocks=N_LAST_BLOCKS))
    features = jax.block_until_ready(fwd(images, params))

    NP = (Himg // PATCH) * (Wimg // PATCH)
    assert len(features) == N_LAST_BLOCKS
    for patch_tokens, class_token in features:
        assert patch_tokens.shape == (B, NP, DIM)
        assert class_token.shape == (B, DIM)
        assert patch_tokens.dtype == F32

    ref = _reference_forward(images, params, patch=PATCH, num_heads=NUM_HEADS,
                             n_last_blocks=N_LAST_BLOCKS)
    for (pt, ct), (pt_r, ct_r) in zip(features, ref):
        assert float(jnp.max(jnp.abs(pt - pt_r))) < 5e-2
        assert float(jnp.max(jnp.abs(ct - ct_r))) < 5e-2

    print("KERNEL_OK")
</pallas_src>

<mosaic_0001>
module attributes {stable_mosaic.version = 11 : i64} {
  func.func @_vit_stack_kernel(%arg0: i32, %arg1: i32, %arg2: memref<1x8x256xbf16, #tpu.memory_space<vmem>>, %arg3: memref<1x8x128xf32, #tpu.memory_space<vmem>>, %arg4: memref<256x128xbf16, #tpu.memory_space<vmem>>, %arg5: memref<1x1x128xf32, #tpu.memory_space<vmem>>, %arg6: memref<1x1x128xf32, #tpu.memory_space<vmem>>, %arg7: memref<1x128x384xbf16, #tpu.memory_space<vmem>>, %arg8: memref<1x1x384xf32, #tpu.memory_space<vmem>>, %arg9: memref<1x128x128xbf16, #tpu.memory_space<vmem>>, %arg10: memref<1x1x128xf32, #tpu.memory_space<vmem>>, %arg11: memref<1x1x128xf32, #tpu.memory_space<vmem>>, %arg12: memref<1x1x128xf32, #tpu.memory_space<vmem>>, %arg13: memref<1x1x128xf32, #tpu.memory_space<vmem>>, %arg14: memref<1x128x512xbf16, #tpu.memory_space<vmem>>, %arg15: memref<1x1x512xf32, #tpu.memory_space<vmem>>, %arg16: memref<1x512x128xbf16, #tpu.memory_space<vmem>>, %arg17: memref<1x1x128xf32, #tpu.memory_space<vmem>>, %arg18: memref<1x1x128xf32, #tpu.memory_space<vmem>>, %arg19: memref<1x128xf32, #tpu.memory_space<vmem>>, %arg20: memref<1x128xf32, #tpu.memory_space<vmem>>, %arg21: memref<1x1x8x128xf32, #tpu.memory_space<vmem>>, %arg22: memref<8x128xf32, #tpu.memory_space<vmem>>) attributes {dimension_semantics = [#tpu.dimension_semantics<parallel>, #tpu.dimension_semantics<arbitrary>], iteration_bounds = array<i64: 2, 4>, scalar_prefetch = 0 : i64, scratch_operands = 1 : i64, tpu.core_type = #tpu.core_type<tc>, window_params = [{transform_indices = @transform_0, window_bounds = array<i64: 1, 8, 256>}, {pipeline_mode = #tpu.pipeline_mode<synchronous>, transform_indices = @transform_1, window_bounds = array<i64: 1, 8, 128>}, {pipeline_mode = #tpu.pipeline_mode<synchronous>, transform_indices = @transform_2, window_bounds = array<i64: 256, 128>}, {transform_indices = @transform_3, window_bounds = array<i64: 1, 1, 128>}, {transform_indices = @transform_4, window_bounds = array<i64: 1, 1, 128>}, {transform_indices = @transform_5, window_bounds = array<i64: 1, 128, 384>}, {transform_indices = @transform_6, window_bounds = array<i64: 1, 1, 384>}, {transform_indices = @transform_7, window_bounds = array<i64: 1, 128, 128>}, {transform_indices = @transform_8, window_bounds = array<i64: 1, 1, 128>}, {transform_indices = @transform_9, window_bounds = array<i64: 1, 1, 128>}, {transform_indices = @transform_10, window_bounds = array<i64: 1, 1, 128>}, {transform_indices = @transform_11, window_bounds = array<i64: 1, 1, 128>}, {transform_indices = @transform_12, window_bounds = array<i64: 1, 128, 512>}, {transform_indices = @transform_13, window_bounds = array<i64: 1, 1, 512>}, {transform_indices = @transform_14, window_bounds = array<i64: 1, 512, 128>}, {transform_indices = @transform_15, window_bounds = array<i64: 1, 1, 128>}, {transform_indices = @transform_16, window_bounds = array<i64: 1, 1, 128>}, {pipeline_mode = #tpu.pipeline_mode<synchronous>, transform_indices = @transform_17, window_bounds = array<i64: 1, 128>}, {pipeline_mode = #tpu.pipeline_mode<synchronous>, transform_indices = @transform_18, window_bounds = array<i64: 1, 128>}, {transform_indices = @transform_19, window_bounds = array<i64: 1, 1, 8, 128>}]} {
    %c0_i32 = arith.constant 0 : i32
    %0 = arith.cmpi eq, %arg1, %c0_i32 : i32
    %1 = arith.extui %0 : i1 to i32
    %c0_i32_0 = arith.constant 0 : i32
    %2 = arith.cmpi ne, %1, %c0_i32_0 : i32
    scf.if %2 {
      %c0_74 = arith.constant 0 : index
      %c0_75 = arith.constant 0 : index
      %c0_76 = arith.constant 0 : index
      %160 = vector.load %arg2[%c0_74, %c0_75, %c0_76] : memref<1x8x256xbf16, #tpu.memory_space<vmem>>, vector<1x8x256xbf16>
      %161 = vector.shape_cast %160 : vector<1x8x256xbf16> to vector<8x256xbf16>
      %c0_77 = arith.constant 0 : index
      %c0_78 = arith.constant 0 : index
      %162 = vector.load %arg4[%c0_77, %c0_78] : memref<256x128xbf16, #tpu.memory_space<vmem>>, vector<256x128xbf16>
      %cst_79 = arith.constant dense<0.000000e+00> : vector<8x128xf32>
      %163 = tpu.matmul %161, %162, %cst_79 {dimension_numbers = #tpu.dot_dimension_numbers<[1], [0], [0], [1], [0, 0, 1, 1], [], []>} : vector<8x256xbf16>, vector<256x128xbf16>, vector<8x128xf32> -> vector<8x128xf32>
      %c0_80 = arith.constant 0 : index
      %c0_81 = arith.constant 0 : index
      %c0_82 = arith.constant 0 : index
      %164 = vector.load %arg3[%c0_80, %c0_81, %c0_82] : memref<1x8x128xf32, #tpu.memory_space<vmem>>, vector<1x8x128xf32>
      %165 = vector.shape_cast %164 : vector<1x8x128xf32> to vector<8x128xf32>
      %166 = arith.addf %163, %165 : vector<8x128xf32>
      %c0_83 = arith.constant 0 : index
      %c0_84 = arith.constant 0 : index
      %167 = vector.load %arg22[%c0_83, %c0_84] : memref<8x128xf32, #tpu.memory_space<vmem>>, vector<8x128xf32>
      tpu.vector_store %arg22[%c0_83, %c0_84], %166 {strides = array<i32>} : memref<8x128xf32, #tpu.memory_space<vmem>>, vector<8x128xf32>,
    } else {
    }
    %c0 = arith.constant 0 : index
    %c0_1 = arith.constant 0 : index
    %3 = vector.load %arg22[%c0, %c0_1] : memref<8x128xf32, #tpu.memory_space<vmem>>, vector<8x128xf32>
    %c0_2 = arith.constant 0 : index
    %c0_3 = arith.constant 0 : index
    %c0_4 = arith.constant 0 : index
    %4 = vector.load %arg5[%c0_2, %c0_3, %c0_4] : memref<1x1x128xf32, #tpu.memory_space<vmem>>, vector<1x1x128xf32>
    %5 = vector.shape_cast %4 : vector<1x1x128xf32> to vector<1x128xf32>
    %c0_5 = arith.constant 0 : index
    %c0_6 = arith.constant 0 : index
    %c0_7 = arith.constant 0 : index
    %6 = vector.load %arg6[%c0_5, %c0_6, %c0_7] : memref<1x1x128xf32, #tpu.memory_space<vmem>>, vector<1x1x128xf32>
    %7 = vector.shape_cast %6 : vector<1x1x128xf32> to vector<1x128xf32>
    %cst = arith.constant dense<0.000000e+00> : vector<8xf32>
    %8 = vector.multi_reduction <add>, %3, %cst [1] : vector<8x128xf32> to vector<8xf32>
    %9 = vector.shape_cast %8 : vector<8xf32> to vector<8x1xf32>
    %cst_8 = arith.constant 1.280000e+02 : f32
    %10 = vector.broadcast %cst_8 : f32 to vector<8x1xf32>
    %11 = arith.divf %9, %10 : vector<8x1xf32>
    %12 = vector.broadcast %11 : vector<8x1xf32> to vector<8x128xf32>
    %13 = arith.subf %3, %12 : vector<8x128xf32>
    %14 = arith.mulf %13, %13 : vector<8x128xf32>
    %cst_9 = arith.constant dense<0.000000e+00> : vector<8xf32>
    %15 = vector.multi_reduction <add>, %14, %cst_9 [1] : vector<8x128xf32> to vector<8xf32>
    %16 = vector.shape_cast %15 : vector<8xf32> to vector<8x1xf32>
    %cst_10 = arith.constant 1.280000e+02 : f32
    %17 = vector.broadcast %cst_10 : f32 to vector<8x1xf32>
    %18 = arith.divf %16, %17 : vector<8x1xf32>
    %19 = vector.broadcast %11 : vector<8x1xf32> to vector<8x128xf32>
    %20 = arith.subf %3, %19 : vector<8x128xf32>
    %cst_11 = arith.constant 9.99999997E-7 : f32
    %21 = vector.broadcast %cst_11 : f32 to vector<8x1xf32>
    %22 = arith.addf %18, %21 : vector<8x1xf32>
    %23 = math.rsqrt %22 : vector<8x1xf32>
    %24 = vector.broadcast %23 : vector<8x1xf32> to vector<8x128xf32>
    %25 = arith.mulf %20, %24 : vector<8x128xf32>
    %26 = vector.broadcast %5 : vector<1x128xf32> to vector<8x128xf32>
    %27 = arith.mulf %25, %26 : vector<8x128xf32>
    %28 = vector.broadcast %7 : vector<1x128xf32> to vector<8x128xf32>
    %29 = arith.addf %27, %28 : vector<8x128xf32>
    %30 = arith.truncf %29 : vector<8x128xf32> to vector<8x128xbf16>
    %c0_12 = arith.constant 0 : index
    %c0_13 = arith.constant 0 : index
    %c0_14 = arith.constant 0 : index
    %31 = vector.load %arg7[%c0_12, %c0_13, %c0_14] : memref<1x128x384xbf16, #tpu.memory_space<vmem>>, vector<1x128x384xbf16>
    %32 = vector.shape_cast %31 : vector<1x128x384xbf16> to vector<128x384xbf16>
    %cst_15 = arith.constant dense<0.000000e+00> : vector<8x384xf32>
    %33 = tpu.matmul %30, %32, %cst_15 {dimension_numbers = #tpu.dot_dimension_numbers<[1], [0], [0], [1], [0, 0, 1, 1], [], []>} : vector<8x128xbf16>, vector<128x384xbf16>, vector<8x384xf32> -> vector<8x384xf32>
    %c0_16 = arith.constant 0 : index
    %c0_17 = arith.constant 0 : index
    %c0_18 = arith.constant 0 : index
    %34 = vector.load %arg8[%c0_16, %c0_17, %c0_18] : memref<1x1x384xf32, #tpu.memory_space<vmem>>, vector<1x1x384xf32>
    %35 = vector.shape_cast %34 : vector<1x1x384xf32> to vector<1x384xf32>
    %36 = vector.broadcast %35 : vector<1x384xf32> to vector<8x384xf32>
    %37 = arith.addf %33, %36 : vector<8x384xf32>
    %38 = arith.truncf %37 : vector<8x384xf32> to vector<8x384xbf16>
    %39 = tpu.iota {dimensions = array<i32: 1>} : vector<1x8xi32>
    %c5_i32 = arith.constant 5 : i32
    %40 = vector.broadcast %c5_i32 : i32 to vector<1x8xi32>
    %41 = arith.cmpi slt, %39, %40 : vector<1x8xi32>
    %cst_19 = arith.constant 0.000000e+00 : f32
    %cst_20 = arith.constant -1.000000e+30 : f32
    %42 = vector.broadcast %cst_19 : f32 to vector<1x8xf32>
    %43 = vector.broadcast %cst_20 : f32 to vector<1x8xf32>
    %44 = arith.select %41, %42, %43 : vector<1x8xi1>, vector<1x8xf32>
    %45 = vector.extract_strided_slice %38 {offsets = [0, 0], sizes = [8, 64], strides = [1, 1]} : vector<8x384xbf16> to vector<8x64xbf16>
    %46 = vector.extract_strided_slice %38 {offsets = [0, 128], sizes = [8, 64], strides = [1, 1]} : vector<8x384xbf16> to vector<8x64xbf16>
    %47 = vector.extract_strided_slice %38 {offsets = [0, 256], sizes = [8, 64], strides = [1, 1]} : vector<8x384xbf16> to vector<8x64xbf16>
    %cst_21 = arith.constant dense<0.000000e+00> : vector<8x8xf32>
    %48 = tpu.matmul %45, %46, %cst_21 {dimension_numbers = #tpu.dot_dimension_numbers<[1], [1], [0], [0], [0, 0, 1, 0], [], []>} : vector<8x64xbf16>, vector<8x64xbf16>, vector<8x8xf32> -> vector<8x8xf32>
    %49 = vector.broadcast %44 : vector<1x8xf32> to vector<8x8xf32>
    %50 = arith.addf %48, %49 : vector<8x8xf32>
    %cst_22 = arith.constant dense<0xFF800000> : vector<8xf32>
    %51 = vector.multi_reduction <maximumf>, %50, %cst_22 [1] : vector<8x8xf32> to vector<8xf32>
    %52 = vector.shape_cast %51 : vector<8xf32> to vector<8x1xf32>
    %53 = vector.broadcast %52 : vector<8x1xf32> to vector<8x8xf32>
    %54 = arith.subf %50, %53 : vector<8x8xf32>
    %55 = math.exp %54 : vector<8x8xf32>
    %cst_23 = arith.constant dense<0.000000e+00> : vector<8xf32>
    %56 = vector.multi_reduction <add>, %55, %cst_23 [1] : vector<8x8xf32> to vector<8xf32>
    %57 = vector.shape_cast %56 : vector<8xf32> to vector<8x1xf32>
    %58 = tpu.reciprocal %57 {approx = true} : vector<8x1xf32> -> vector<8x1xf32>
    %59 = vector.broadcast %58 : vector<8x1xf32> to vector<8x8xf32>
    %60 = arith.mulf %55, %59 : vector<8x8xf32>
    %61 = arith.truncf %60 : vector<8x8xf32> to vector<8x8xbf16>
    %cst_24 = arith.constant dense<0.000000e+00> : vector<8x64xf32>
    %62 = tpu.matmul %61, %47, %cst_24 {dimension_numbers = #tpu.dot_dimension_numbers<[1], [0], [0], [1], [0, 0, 1, 1], [], []>} : vector<8x8xbf16>, vector<8x64xbf16>, vector<8x64xf32> -> vector<8x64xf32>
    %63 = arith.truncf %62 : vector<8x64xf32> to vector<8x64xbf16>
    %64 = vector.extract_strided_slice %38 {offsets = [0, 64], sizes = [8, 64], strides = [1, 1]} : vector<8x384xbf16> to vector<8x64xbf16>
    %65 = vector.extract_strided_slice %38 {offsets = [0, 192], sizes = [8, 64], strides = [1, 1]} : vector<8x384xbf16> to vector<8x64xbf16>
    %66 = vector.extract_strided_slice %38 {offsets = [0, 320], sizes = [8, 64], strides = [1, 1]} : vector<8x384xbf16> to vector<8x64xbf16>
    %cst_25 = arith.constant dense<0.000000e+00> : vector<8x8xf32>
    %67 = tpu.matmul %64, %65, %cst_25 {dimension_numbers = #tpu.dot_dimension_numbers<[1], [1], [0], [0], [0, 0, 1, 0], [], []>} : vector<8x64xbf16>, vector<8x64xbf16>, vector<8x8xf32> -> vector<8x8xf32>
    %68 = vector.broadcast %44 : vector<1x8xf32> to vector<8x8xf32>
    %69 = arith.addf %67, %68 : vector<8x8xf32>
    %cst_26 = arith.constant dense<0xFF800000> : vector<8xf32>
    %70 = vector.multi_reduction <maximumf>, %69, %cst_26 [1] : vector<8x8xf32> to vector<8xf32>
    %71 = vector.shape_cast %70 : vector<8xf32> to vector<8x1xf32>
    %72 = vector.broadcast %71 : vector<8x1xf32> to vector<8x8xf32>
    %73 = arith.subf %69, %72 : vector<8x8xf32>
    %74 = math.exp %73 : vector<8x8xf32>
    %cst_27 = arith.constant dense<0.000000e+00> : vector<8xf32>
    %75 = vector.multi_reduction <add>, %74, %cst_27 [1] : vector<8x8xf32> to vector<8xf32>
    %76 = vector.shape_cast %75 : vector<8xf32> to vector<8x1xf32>
    %77 = tpu.reciprocal %76 {approx = true} : vector<8x1xf32> -> vector<8x1xf32>
    %78 = vector.broadcast %77 : vector<8x1xf32> to vector<8x8xf32>
    %79 = arith.mulf %74, %78 : vector<8x8xf32>
    %80 = arith.truncf %79 : vector<8x8xf32> to vector<8x8xbf16>
    %cst_28 = arith.constant dense<0.000000e+00> : vector<8x64xf32>
    %81 = tpu.matmul %80, %66, %cst_28 {dimension_numbers = #tpu.dot_dimension_numbers<[1], [0], [0], [1], [0, 0, 1, 1], [], []>} : vector<8x8xbf16>, vector<8x64xbf16>, vector<8x64xf32> -> vector<8x64xf32>
    %82 = arith.truncf %81 : vector<8x64xf32> to vector<8x64xbf16>
    %83 = tpu.concatenate %63, %82 in 1 : vector<8x64xbf16>, vector<8x64xbf16> -> vector<8x128xbf16>
    %c0_29 = arith.constant 0 : index
    %c0_30 = arith.constant 0 : index
    %c0_31 = arith.constant 0 : index
    %84 = vector.load %arg9[%c0_29, %c0_30, %c0_31] : memref<1x128x128xbf16, #tpu.memory_space<vmem>>, vector<1x128x128xbf16>
    %85 = vector.shape_cast %84 : vector<1x128x128xbf16> to vector<128x128xbf16>
    %cst_32 = arith.constant dense<0.000000e+00> : vector<8x128xf32>
    %86 = tpu.matmul %83, %85, %cst_32 {dimension_numbers = #tpu.dot_dimension_numbers<[1], [0], [0], [1], [0, 0, 1, 1], [], []>} : vector<8x128xbf16>, vector<128x128xbf16>, vector<8x128xf32> -> vector<8x128xf32>
    %c0_33 = arith.constant 0 : index
    %c0_34 = arith.constant 0 : index
    %c0_35 = arith.constant 0 : index
    %87 = vector.load %arg10[%c0_33, %c0_34, %c0_35] : memref<1x1x128xf32, #tpu.memory_space<vmem>>, vector<1x1x128xf32>
    %88 = vector.shape_cast %87 : vector<1x1x128xf32> to vector<1x128xf32>
    %89 = vector.broadcast %88 : vector<1x128xf32> to vector<8x128xf32>
    %90 = arith.addf %86, %89 : vector<8x128xf32>
    %c0_36 = arith.constant 0 : index
    %c0_37 = arith.constant 0 : index
    %c0_38 = arith.constant 0 : index
    %91 = vector.load %arg11[%c0_36, %c0_37, %c0_38] : memref<1x1x128xf32, #tpu.memory_space<vmem>>, vector<1x1x128xf32>
    %92 = vector.shape_cast %91 : vector<1x1x128xf32> to vector<1x128xf32>
    %93 = vector.broadcast %92 : vector<1x128xf32> to vector<8x128xf32>
    %94 = arith.mulf %93, %90 : vector<8x128xf32>
    %95 = arith.addf %3, %94 : vector<8x128xf32>
    %c0_39 = arith.constant 0 : index
    %c0_40 = arith.constant 0 : index
    %c0_41 = arith.constant 0 : index
    %96 = vector.load %arg12[%c0_39, %c0_40, %c0_41] : memref<1x1x128xf32, #tpu.memory_space<vmem>>, vector<1x1x128xf32>
    %97 = vector.shape_cast %96 : vector<1x1x128xf32> to vector<1x128xf32>
    %c0_42 = arith.constant 0 : index
    %c0_43 = arith.constant 0 : index
    %c0_44 = arith.constant 0 : index
    %98 = vector.load %arg13[%c0_42, %c0_43, %c0_44] : memref<1x1x128xf32, #tpu.memory_space<vmem>>, vector<1x1x128xf32>
    %99 = vector.shape_cast %98 : vector<1x1x128xf32> to vector<1x128xf32>
    %cst_45 = arith.constant dense<0.000000e+00> : vector<8xf32>
    %100 = vector.multi_reduction <add>, %95, %cst_45 [1] : vector<8x128xf32> to vector<8xf32>
    %101 = vector.shape_cast %100 : vector<8xf32> to vector<8x1xf32>
    %cst_46 = arith.constant 1.280000e+02 : f32
    %102 = vector.broadcast %cst_46 : f32 to vector<8x1xf32>
    %103 = arith.divf %101, %102 : vector<8x1xf32>
    %104 = vector.broadcast %103 : vector<8x1xf32> to vector<8x128xf32>
    %105 = arith.subf %95, %104 : vector<8x128xf32>
    %106 = arith.mulf %105, %105 : vector<8x128xf32>
    %cst_47 = arith.constant dense<0.000000e+00> : vector<8xf32>
    %107 = vector.multi_reduction <add>, %106, %cst_47 [1] : vector<8x128xf32> to vector<8xf32>
    %108 = vector.shape_cast %107 : vector<8xf32> to vector<8x1xf32>
    %cst_48 = arith.constant 1.280000e+02 : f32
    %109 = vector.broadcast %cst_48 : f32 to vector<8x1xf32>
    %110 = arith.divf %108, %109 : vector<8x1xf32>
    %111 = vector.broadcast %103 : vector<8x1xf32> to vector<8x128xf32>
    %112 = arith.subf %95, %111 : vector<8x128xf32>
    %cst_49 = arith.constant 9.99999997E-7 : f32
    %113 = vector.broadcast %cst_49 : f32 to vector<8x1xf32>
    %114 = arith.addf %110, %113 : vector<8x1xf32>
    %115 = math.rsqrt %114 : vector<8x1xf32>
    %116 = vector.broadcast %115 : vector<8x1xf32> to vector<8x128xf32>
    %117 = arith.mulf %112, %116 : vector<8x128xf32>
    %118 = vector.broadcast %97 : vector<1x128xf32> to vector<8x128xf32>
    %119 = arith.mulf %117, %118 : vector<8x128xf32>
    %120 = vector.broadcast %99 : vector<1x128xf32> to vector<8x128xf32>
    %121 = arith.addf %119, %120 : vector<8x128xf32>
    %122 = arith.truncf %121 : vector<8x128xf32> to vector<8x128xbf16>
    %c0_50 = arith.constant 0 : index
    %c0_51 = arith.constant 0 : index
    %c0_52 = arith.constant 0 : index
    %123 = vector.load %arg14[%c0_50, %c0_51, %c0_52] : memref<1x128x512xbf16, #tpu.memory_space<vmem>>, vector<1x128x512xbf16>
    %124 = vector.shape_cast %123 : vector<1x128x512xbf16> to vector<128x512xbf16>
    %cst_53 = arith.constant dense<0.000000e+00> : vector<8x512xf32>
    %125 = tpu.matmul %122, %124, %cst_53 {dimension_numbers = #tpu.dot_dimension_numbers<[1], [0], [0], [1], [0, 0, 1, 1], [], []>} : vector<8x128xbf16>, vector<128x512xbf16>, vector<8x512xf32> -> vector<8x512xf32>
    %c0_54 = arith.constant 0 : index
    %c0_55 = arith.constant 0 : index
    %c0_56 = arith.constant 0 : index
    %126 = vector.load %arg15[%c0_54, %c0_55, %c0_56] : memref<1x1x512xf32, #tpu.memory_space<vmem>>, vector<1x1x512xf32>
    %127 = vector.shape_cast %126 : vector<1x1x512xf32> to vector<1x512xf32>
    %128 = vector.broadcast %127 : vector<1x512xf32> to vector<8x512xf32>
    %129 = arith.addf %125, %128 : vector<8x512xf32>
    %130 = arith.mulf %129, %129 : vector<8x512xf32>
    %131 = arith.mulf %129, %130 : vector<8x512xf32>
    %cst_57 = arith.constant 4.471500e-02 : f32
    %132 = vector.broadcast %cst_57 : f32 to vector<8x512xf32>
    %133 = arith.mulf %132, %131 : vector<8x512xf32>
    %134 = arith.addf %129, %133 : vector<8x512xf32>
    %cst_58 = arith.constant 0.797884583 : f32
    %135 = vector.broadcast %cst_58 : f32 to vector<8x512xf32>
    %136 = arith.mulf %135, %134 : vector<8x512xf32>
    %137 = math.tanh %136 : vector<8x512xf32>
    %cst_59 = arith.constant 1.000000e+00 : f32
    %138 = vector.broadcast %cst_59 : f32 to vector<8x512xf32>
    %139 = arith.addf %138, %137 : vector<8x512xf32>
    %cst_60 = arith.constant 5.000000e-01 : f32
    %140 = vector.broadcast %cst_60 : f32 to vector<8x512xf32>
    %141 = arith.mulf %140, %139 : vector<8x512xf32>
    %142 = arith.mulf %129, %141 : vector<8x512xf32>
    %143 = arith.truncf %142 : vector<8x512xf32> to vector<8x512xbf16>
    %c0_61 = arith.constant 0 : index
    %c0_62 = arith.constant 0 : index
    %c0_63 = arith.constant 0 : index
    %144 = vector.load %arg16[%c0_61, %c0_62, %c0_63] : memref<1x512x128xbf16, #tpu.memory_space<vmem>>, vector<1x512x128xbf16>
    %145 = vector.shape_cast %144 : vector<1x512x128xbf16> to vector<512x128xbf16>
    %cst_64 = arith.constant dense<0.000000e+00> : vector<8x128xf32>
    %146 = tpu.matmul %143, %145, %cst_64 {dimension_numbers = #tpu.dot_dimension_numbers<[1], [0], [0], [1], [0, 0, 1, 1], [], []>} : vector<8x512xbf16>, vector<512x128xbf16>, vector<8x128xf32> -> vector<8x128xf32>
    %c0_65 = arith.constant 0 : index
    %c0_66 = arith.constant 0 : index
    %c0_67 = arith.constant 0 : index
    %147 = vector.load %arg17[%c0_65, %c0_66, %c0_67] : memref<1x1x128xf32, #tpu.memory_space<vmem>>, vector<1x1x128xf32>
    %148 = vector.shape_cast %147 : vector<1x1x128xf32> to vector<1x128xf32>
    %149 = vector.broadcast %148 : vector<1x128xf32> to vector<8x128xf32>
    %150 = arith.addf %146, %149 : vector<8x128xf32>
    %c0_68 = arith.constant 0 : index
    %c0_69 = arith.constant 0 : index
    %c0_70 = arith.constant 0 : index
    %151 = vector.load %arg18[%c0_68, %c0_69, %c0_70] : memref<1x1x128xf32, #tpu.memory_space<vmem>>, vector<1x1x128xf32>
    %152 = vector.shape_cast %151 : vector<1x1x128xf32> to vector<1x128xf32>
    %153 = vector.broadcast %152 : vector<1x128xf32> to vector<8x128xf32>
    %154 = arith.mulf %153, %150 : vector<8x128xf32>
    %155 = arith.addf %95, %154 : vector<8x128xf32>
    %c0_71 = arith.constant 0 : index
    %c0_72 = arith.constant 0 : index
    %156 = vector.load %arg22[%c0_71, %c0_72] : memref<8x128xf32, #tpu.memory_space<vmem>>, vector<8x128xf32>
    tpu.vector_store %arg22[%c0_71, %c0_72], %155 {strides = array<i32>} : memref<8x128xf32, #tpu.memory_space<vmem>>, vector<8x128xf32>,
    %c2_i32 = arith.constant 2 : i32
    %157 = arith.cmpi sge, %arg1, %c2_i32 : i32
    %158 = arith.extui %157 : i1 to i32
    %c0_i32_73 = arith.constant 0 : i32
    %159 = arith.cmpi ne, %158, %c0_i32_73 : i32
    scf.if %159 {
      %c0_74 = arith.constant 0 : index
      %c0_75 = arith.constant 0 : index
      %160 = vector.load %arg19[%c0_74, %c0_75] : memref<1x128xf32, #tpu.memory_space<vmem>>, vector<1x128xf32>
      %c0_76 = arith.constant 0 : index
      %c0_77 = arith.constant 0 : index
      %161 = vector.load %arg20[%c0_76, %c0_77] : memref<1x128xf32, #tpu.memory_space<vmem>>, vector<1x128xf32>
      %cst_78 = arith.constant dense<0.000000e+00> : vector<8xf32>
      %162 = vector.multi_reduction <add>, %155, %cst_78 [1] : vector<8x128xf32> to vector<8xf32>
      %163 = vector.shape_cast %162 : vector<8xf32> to vector<8x1xf32>
      %cst_79 = arith.constant 1.280000e+02 : f32
      %164 = vector.broadcast %cst_79 : f32 to vector<8x1xf32>
      %165 = arith.divf %163, %164 : vector<8x1xf32>
      %166 = vector.broadcast %165 : vector<8x1xf32> to vector<8x128xf32>
      %167 = arith.subf %155, %166 : vector<8x128xf32>
      %168 = arith.mulf %167, %167 : vector<8x128xf32>
      %cst_80 = arith.constant dense<0.000000e+00> : vector<8xf32>
      %169 = vector.multi_reduction <add>, %168, %cst_80 [1] : vector<8x128xf32> to vector<8xf32>
      %170 = vector.shape_cast %169 : vector<8xf32> to vector<8x1xf32>
      %cst_81 = arith.constant 1.280000e+02 : f32
      %171 = vector.broadcast %cst_81 : f32 to vector<8x1xf32>
      %172 = arith.divf %170, %171 : vector<8x1xf32>
      %173 = vector.broadcast %165 : vector<8x1xf32> to vector<8x128xf32>
      %174 = arith.subf %155, %173 : vector<8x128xf32>
      %cst_82 = arith.constant 9.99999997E-7 : f32
      %175 = vector.broadcast %cst_82 : f32 to vector<8x1xf32>
      %176 = arith.addf %172, %175 : vector<8x1xf32>
      %177 = math.rsqrt %176 : vector<8x1xf32>
      %178 = vector.broadcast %177 : vector<8x1xf32> to vector<8x128xf32>
      %179 = arith.mulf %174, %178 : vector<8x128xf32>
      %180 = vector.broadcast %160 : vector<1x128xf32> to vector<8x128xf32>
      %181 = arith.mulf %179, %180 : vector<8x128xf32>
      %182 = vector.broadcast %161 : vector<1x128xf32> to vector<8x128xf32>
      %183 = arith.addf %181, %182 : vector<8x128xf32>
      %c0_83 = arith.constant 0 : index
      %c0_84 = arith.constant 0 : index
      %c0_85 = arith.constant 0 : index
      %c0_86 = arith.constant 0 : index
      %184 = vector.load %arg21[%c0_83, %c0_84, %c0_85, %c0_86] : memref<1x1x8x128xf32, #tpu.memory_space<vmem>>, vector<1x1x8x128xf32>
      %185 = vector.shape_cast %184 : vector<1x1x8x128xf32> to vector<8x128xf32>
      %186 = vector.shape_cast %183 : vector<8x128xf32> to vector<1x1x8x128xf32>
      tpu.vector_store %arg21[%c0_83, %c0_84, %c0_85, %c0_86], %186 {strides = array<i32>} : memref<1x1x8x128xf32, #tpu.memory_space<vmem>>, vector<1x1x8x128xf32>,
    } else {
    }
    return
  }
  func.func @transform_0(%arg0: i32, %arg1: i32) -> (i32, i32, i32) {
    %c0_i32 = arith.constant 0 : i32
    %c0_i32_0 = arith.constant 0 : i32
    %c0_i32_1 = arith.constant 0 : i32
    return %arg0, %c0_i32, %c0_i32_0 : i32, i32, i32
  }
  func.func @transform_1(%arg0: i32, %arg1: i32) -> (i32, i32, i32) {
    %c0_i32 = arith.constant 0 : i32
    %c0_i32_0 = arith.constant 0 : i32
    %c0_i32_1 = arith.constant 0 : i32
    %c0_i32_2 = arith.constant 0 : i32
    return %c0_i32, %c0_i32_0, %c0_i32_1 : i32, i32, i32
  }
  func.func @transform_2(%arg0: i32, %arg1: i32) -> (i32, i32) {
    %c0_i32 = arith.constant 0 : i32
    %c0_i32_0 = arith.constant 0 : i32
    %c0_i32_1 = arith.constant 0 : i32
    return %c0_i32, %c0_i32_0 : i32, i32
  }
  func.func @transform_3(%arg0: i32, %arg1: i32) -> (i32, i32, i32) {
    %c0_i32 = arith.constant 0 : i32
    %c0_i32_0 = arith.constant 0 : i32
    %c0_i32_1 = arith.constant 0 : i32
    return %arg1, %c0_i32, %c0_i32_0 : i32, i32, i32
  }
  func.func @transform_4(%arg0: i32, %arg1: i32) -> (i32, i32, i32) {
    %c0_i32 = arith.constant 0 : i32
    %c0_i32_0 = arith.constant 0 : i32
    %c0_i32_1 = arith.constant 0 : i32
    return %arg1, %c0_i32, %c0_i32_0 : i32, i32, i32
  }
  func.func @transform_5(%arg0: i32, %arg1: i32) -> (i32, i32, i32) {
    %c0_i32 = arith.constant 0 : i32
    %c0_i32_0 = arith.constant 0 : i32
    %c0_i32_1 = arith.constant 0 : i32
    return %arg1, %c0_i32, %c0_i32_0 : i32, i32, i32
  }
  func.func @transform_6(%arg0: i32, %arg1: i32) -> (i32, i32, i32) {
    %c0_i32 = arith.constant 0 : i32
    %c0_i32_0 = arith.constant 0 : i32
    %c0_i32_1 = arith.constant 0 : i32
    return %arg1, %c0_i32, %c0_i32_0 : i32, i32, i32
  }
  func.func @transform_7(%arg0: i32, %arg1: i32) -> (i32, i32, i32) {
    %c0_i32 = arith.constant 0 : i32
    %c0_i32_0 = arith.constant 0 : i32
    %c0_i32_1 = arith.constant 0 : i32
    return %arg1, %c0_i32, %c0_i32_0 : i32, i32, i32
  }
  func.func @transform_8(%arg0: i32, %arg1: i32) -> (i32, i32, i32) {
    %c0_i32 = arith.constant 0 : i32
    %c0_i32_0 = arith.constant 0 : i32
    %c0_i32_1 = arith.constant 0 : i32
    return %arg1, %c0_i32, %c0_i32_0 : i32, i32, i32
  }
  func.func @transform_9(%arg0: i32, %arg1: i32) -> (i32, i32, i32) {
    %c0_i32 = arith.constant 0 : i32
    %c0_i32_0 = arith.constant 0 : i32
    %c0_i32_1 = arith.constant 0 : i32
    return %arg1, %c0_i32, %c0_i32_0 : i32, i32, i32
  }
  func.func @transform_10(%arg0: i32, %arg1: i32) -> (i32, i32, i32) {
    %c0_i32 = arith.constant 0 : i32
    %c0_i32_0 = arith.constant 0 : i32
    %c0_i32_1 = arith.constant 0 : i32
    return %arg1, %c0_i32, %c0_i32_0 : i32, i32, i32
  }
  func.func @transform_11(%arg0: i32, %arg1: i32) -> (i32, i32, i32) {
    %c0_i32 = arith.constant 0 : i32
    %c0_i32_0 = arith.constant 0 : i32
    %c0_i32_1 = arith.constant 0 : i32
    return %arg1, %c0_i32, %c0_i32_0 : i32, i32, i32
  }
  func.func @transform_12(%arg0: i32, %arg1: i32) -> (i32, i32, i32) {
    %c0_i32 = arith.constant 0 : i32
    %c0_i32_0 = arith.constant 0 : i32
    %c0_i32_1 = arith.constant 0 : i32
    return %arg1, %c0_i32, %c0_i32_0 : i32, i32, i32
  }
  func.func @transform_13(%arg0: i32, %arg1: i32) -> (i32, i32, i32) {
    %c0_i32 = arith.constant 0 : i32
    %c0_i32_0 = arith.constant 0 : i32
    %c0_i32_1 = arith.constant 0 : i32
    return %arg1, %c0_i32, %c0_i32_0 : i32, i32, i32
  }
  func.func @transform_14(%arg0: i32, %arg1: i32) -> (i32, i32, i32) {
    %c0_i32 = arith.constant 0 : i32
    %c0_i32_0 = arith.constant 0 : i32
    %c0_i32_1 = arith.constant 0 : i32
    return %arg1, %c0_i32, %c0_i32_0 : i32, i32, i32
  }
  func.func @transform_15(%arg0: i32, %arg1: i32) -> (i32, i32, i32) {
    %c0_i32 = arith.constant 0 : i32
    %c0_i32_0 = arith.constant 0 : i32
    %c0_i32_1 = arith.constant 0 : i32
    return %arg1, %c0_i32, %c0_i32_0 : i32, i32, i32
  }
  func.func @transform_16(%arg0: i32, %arg1: i32) -> (i32, i32, i32) {
    %c0_i32 = arith.constant 0 : i32
    %c0_i32_0 = arith.constant 0 : i32
    %c0_i32_1 = arith.constant 0 : i32
    return %arg1, %c0_i32, %c0_i32_0 : i32, i32, i32
  }
  func.func @transform_17(%arg0: i32, %arg1: i32) -> (i32, i32) {
    %c0_i32 = arith.constant 0 : i32
    %c0_i32_0 = arith.constant 0 : i32
    %c0_i32_1 = arith.constant 0 : i32
    return %c0_i32, %c0_i32_0 : i32, i32
  }
  func.func @transform_18(%arg0: i32, %arg1: i32) -> (i32, i32) {
    %c0_i32 = arith.constant 0 : i32
    %c0_i32_0 = arith.constant 0 : i32
    %c0_i32_1 = arith.constant 0 : i32
    return %c0_i32, %c0_i32_0 : i32, i32
  }
  func.func @transform_19(%arg0: i32, %arg1: i32) -> (i32, i32, i32, i32) {
    %c2_i32 = arith.constant 2 : i32
    %0 = arith.subi %arg1, %c2_i32 : i32
    %c0_i32 = arith.constant 0 : i32
    %1 = arith.maxsi %0, %c0_i32 : i32
    %c0_i32_0 = arith.constant 0 : i32
    %c0_i32_1 = arith.constant 0 : i32
    %c0_i32_2 = arith.constant 0 : i32
    return %1, %arg0, %c0_i32_0, %c0_i32_1 : i32, i32, i32, i32
  }
}

</mosaic_0001>

<bundles_post_ra>
// kernel: model_with_intermediate_layers.1
= control target key start
LH: loop header
LB: loop body
LE: loop exit
PB: predicated region body
PF: predicated region fallthrough
CT: control target
= control target key end

     0   :  { %s3236_s30 = smov 0   ;;  %s3238_s20 = smov 0   ;;  %s3664_s0 = inlined_call_operand.vmem [shape: bf16[2,8,256], index: 0, kind: input, shape index: {}]   ;;  %s3665_s1 = inlined_call_operand.vmem [shape: f32[1,8,128], index: 1, kind: input, shape index: {}]   ;;  %s3666_s2 = inlined_call_operand.vmem [shape: bf16[256,128], index: 2, kind: input, shape index: {}]   ;;  %s3667_s3 = inlined_call_operand.vmem [shape: f32[4,1,128], index: 3, kind: input, shape index: {}]   ;;  %s3668_s4 = inlined_call_operand.vmem [shape: f32[4,1,128], index: 4, kind: input, shape index: {}]   ;;  %s3669_s5 = inlined_call_operand.vmem [shape: bf16[4,128,384], index: 5, kind: input, shape index: {}]   ;;  %s3670_s6 = inlined_call_operand.vmem [shape: f32[4,1,384], index: 6, kind: input, shape index: {}]   ;;  %s3671_s7 = inlined_call_operand.vmem [shape: bf16[4,128,128], index: 7, kind: input, shape index: {}]   ;;  %s3672_s8 = inlined_call_operand.vmem [shape: f32[4,1,128], index: 8, kind: input, shape index: {}]   ;;  %s3673_s9 = inlined_call_operand.vmem [shape: f32[4,1,128], index: 9, kind: input, shape index: {}]   ;;  %s3674_s10 = inlined_call_operand.vmem [shape: f32[4,1,128], index: 10, kind: input, shape index: {}]   ;;  %s3675_s11 = inlined_call_operand.vmem [shape: f32[4,1,128], index: 11, kind: input, shape index: {}]   ;;  %s3676_s12 = inlined_call_operand.vmem [shape: bf16[4,128,512], index: 12, kind: input, shape index: {}]   ;;  %s3677_s13 = inlined_call_operand.vmem [shape: f32[4,1,512], index: 13, kind: input, shape index: {}]   ;;  %s3678_s14 = inlined_call_operand.vmem [shape: bf16[4,512,128], index: 14, kind: input, shape index: {}]   ;;  %s3679_s15 = inlined_call_operand.vmem [shape: f32[4,1,128], index: 15, kind: input, shape index: {}]   ;;  %s3680_s16 = inlined_call_operand.vmem [shape: f32[4,1,128], index: 16, kind: input, shape index: {}]   ;;  %s3681_s17 = inlined_call_operand.vmem [shape: f32[1,128], index: 17, kind: input, shape index: {}]   ;;  %s3682_s18 = inlined_call_operand.vmem [shape: f32[1,128], index: 18, kind: input, shape index: {}]   ;;  %s3683_s19 = inlined_call_operand.vmem [shape: f32[2,2,8,128], index: 19, kind: output, shape index: {}]  }
   0x1   :  { %3689 = sst [smem:[#allocation10_spill]] %s3664_s0  ;;  %s3234_s0 = smov 0  }
   0x2   :  { %3690 = sst [smem:[#allocation11_spill]] %s3665_s1  ;;  %s3240_s21 = smov 0  }
   0x3   :  { %3691 = sst [smem:[#allocation12_spill]] %s3666_s2  ;;  %s3242_s1 = smov 0  }
   0x4   :  { %3692 = sst [smem:[#allocation13_spill]] %s3667_s3 }
   0x5   :  { %3693 = sst [smem:[#allocation14_spill]] %s3668_s4 }
   0x6   :  { %3694 = sst [smem:[#allocation15_spill]] %s3669_s5 }
   0x7   :  { %3695 = sst [smem:[#allocation16_spill]] %s3670_s6 }
   0x8   :  { %3696 = sst [smem:[#allocation17_spill]] %s3671_s7 }
   0x9   :  { %3697 = sst [smem:[#allocation18_spill]] %s3676_s12 }
   0xa   :  { %3698 = sst [smem:[#allocation19_spill]] %s3677_s13 }
   0xb   :  { %3699 = sst [smem:[#allocation20_spill]] %s3679_s15 }
   0xc   :  { %3700 = sst [smem:[#allocation21_spill]] %s3680_s16 }
   0xd   :  { %3701 = sst [smem:[#allocation22_spill]] %s3681_s17 }
   0xe   :  { %3702 = sst [smem:[#allocation23_spill]] %s3682_s18 }
   0xf   :  { %3703 = sst [smem:[#allocation24_spill]] %s3683_s19 }
  0x10 LB: > { %3704 = sst [smem:[#allocation3_spill]] %s3113_s0  ;;  %s38_s22 = sadd.s32 1, %s3121_s20  ;;  %s3129_s1 = sphi %s3242_s1, %s29_s1   ;;  %s3125_s21 = sphi %s3240_s21, %s3743_s21   ;;  %s3121_s20 = sphi %s3238_s20, %s3742_s20   ;;  %s3117_s30 = sphi %s3236_s30, %s3741_s30   ;;  %s3113_s0 = sphi %s3234_s0, %s3740_s0  }
  0x11   : > { %3705 = sst [smem:[#allocation4_spill]] %s3121_s20  ;;  %s41_s2 = sadd.s32 1, %s3125_s21 }
  0x12   : > { %3706 = sst [smem:[#allocation5_spill]] %s3125_s21  ;;  %p39_p0 = scmp.ge.s32.totalorder %s38_s22, 4 }
  0x13   : > { %3707 = sst [smem:[#allocation6_spill]] %s3129_s1  ;;  %p2419_p1 = scmp.ge.s32.totalorder %s3129_s1, 1 }
  0x14   : > { %p679_p2 = scmp.lt.s32.totalorder %s3129_s1, 9  ;;  %s3745_s22 = smov (%p39_p0, %s38_s22), 0 }
  0x15   : > { %3708 = sst [smem:[#allocation7_spill]] %s3745_s22  ;;  %s3747_s2 = smov (!%p39_p0, %s41_s2), %s3125_s21 }
  0x16   : > { %p680_p3 = pnand %p2419_p1, %p679_p2  ;;  %p43_p4 = scmp.ge.s32.totalorder %s3747_s2, 2 }
  0x18   : > { %s3749_s2 = smov (%p43_p4, %s3747_s2), 0  ;;  %683 = sbr.rel (%p680_p3) target bundleno = 2652 (0xa5c), region = 96 }
  0x19   : > { %3709 = sst [smem:[#allocation8_spill]] %s3749_s2 }
  0x1d   : > { %p793_p5 = scmp.lt.s32.totalorder %s3117_s30, 1  ;;  %p798_p6 = scmp.lt.s32.totalorder %s3113_s0, 3 }
  0x1e   : > { %s2430_s23 = sadd.s32 4294967294, %s3113_s0  ;;  %s3710_s27 = sld [smem:[#allocation10_spill]] }
  0x1f   : > { %s3751_s30 = smov (!%p793_p5, %s3117_s30), 1  ;;  %p851_p7 = scmp.gt.s32.totalorder %s2430_s23, 0 }
  0x20   : > { %s3269_s24 = scalar_select %p798_p6, %s3113_s0, 3 }
  0x21   : > { %s2894_s25 = sshll.u32 %s3751_s30, 3  ;;  %s3713_s5 = sld [smem:[#allocation15_spill]] }
  0x22   : > { %s3012_s17 = smul.u32 192, %s3269_s24  ;;  %s2895_s19 = sshll.u32 %s3269_s24, 6 }
  0x23   : > { %s3013_s0 = smul.u32 3, %s3269_s24  ;;  %s3714_s7 = sld [smem:[#allocation17_spill]] }
  0x24   : > { %s3274_s28 = scalar_lea.vmem %s3710_s27, %s2894_s25  ;;  %s3715_s6 = sld [smem:[#allocation16_spill]] }
  0x25   : > { %s3716_s12 = sld [smem:[#allocation18_spill]]  ;;  %s2427_s1 = sshll.u32 %s3269_s24, 2 }
  0x26   : > { %s3717_s13 = sld [smem:[#allocation19_spill]]  ;;  %p2431_p8 = scmp.lt.s32.totalorder %s2430_s23, 1 }
  0x27   : > { %s3290_s3 = scalar_lea.vmem %s3713_s5, %s3012_s17  ;;  %s3720_s22 = sld [smem:[#allocation21_spill]] }
  0x28   : > { %s3721_s15 = sld [smem:[#allocation24_spill]] }
  0x29   : > { %s3295_s27 = scalar_lea.vmem %s3714_s7, %s2895_s19  ;;  %s2896_s7 = sshll.u32 %s3269_s24, 8 }
  0x2a   : > { %s3300_s20 = scalar_lea.vmem %s3715_s6, %s3013_s0  ;;  %s3333_s16 = scalar_lea.vmem %s3678_s14, %s2896_s7 }
  0x2b   : > { %s3322_s2 = scalar_lea.vmem %s3716_s12, %s2896_s7  ;;  %s3719_s19 = sld [smem:[#allocation20_spill]] }
  0x2c   : > { %s3328_s4 = scalar_lea.vmem %s3717_s13, %s2427_s1  ;;  %s3722_s21 = sld [smem:[#allocation3_spill]] }
  0x2d   : > { %3718 = sst [smem:[#allocation9_spill]] %s3328_s4  ;;  %s849_s0 = scalar_lea.vmem %s3720_s22, %s3269_s24 }
  0x2e   : > { %s852_s12 = scalar_select %p851_p7, %s2430_s23, 0 }
  0x30   : > { %s3753_s12 = smov (!%p2431_p8, %s852_s12), 1 }
  0x31   : > { %s846_s26 = scalar_lea.vmem %s3719_s19, %s3269_s24  ;;  %s2436_s18 = sshll.u32 %s3753_s12, 1 }
  0x32   : > { %s858_s1 = sadd.s32 %s2436_s18, %s3751_s30  ;;  %p2438_p9 = scmp.ne.s32.totalorder %s3722_s21, 0 }
  0x33   : > { %s2437_s29 = sshll.u32 %s858_s1, 3  ;;  %s3723_s19 = sld [smem:[#allocation12_spill]] (!%p2438_p9) }
  0x34   : > { %s3347_s7 = scalar_lea.vmem %s3721_s15, %s2437_s29  ;;  %868 = sbr.rel (%p2438_p9) target bundleno = 224 (0xe0), region = 100 }
  0x35   : > { %s3724_s6 = sld [smem:[#allocation11_spill]] (!%p2438_p9) }
  0x39   : > { %v2907_v0 = vld [vmem:[%s3723_s19 + $0x38] sm:$0xff]  ;;  %v2906_v2 = vld [vmem:[%s3723_s19 + $0x30] sm:$0xff]  ;;  %v2905_v4 = vld [vmem:[%s3723_s19 + $0x28] sm:$0xff] }
  0x3a   : > { %v2915_v1 = vld [vmem:[%s3723_s19 + $0x78] sm:$0xff]  ;;  %1006 = vmatpush.bf16.msra.mxu0 %v2907_v0  ;;  %v2914_v3 = vld [vmem:[%s3723_s19 + $0x70] sm:$0xff]  ;;  %v2913_v5 = vld [vmem:[%s3723_s19 + $0x68] sm:$0xff] }
  0x3b   : > { %1019 = vmatpush.bf16.msra.mxu1 %v2915_v1  ;;  %v2904_v6 = vld [vmem:[%s3723_s19 + $0x20] sm:$0xff]  ;;  %v2903_v8 = vld [vmem:[%s3723_s19 + $0x18] sm:$0xff]  ;;  %v2902_v10 = vld [vmem:[%s3723_s19 + $0x10] sm:$0xff] }
  0x3c   : > { %v2912_v7 = vld [vmem:[%s3723_s19 + $0x60] sm:$0xff]  ;;  %v2911_v9 = vld [vmem:[%s3723_s19 + $0x58] sm:$0xff]  ;;  %v2910_v11 = vld [vmem:[%s3723_s19 + $0x50] sm:$0xff] }
  0x3d   : > { %v2901_v12 = vld [vmem:[%s3723_s19 + $0x8] sm:$0xff]  ;;  %v869_v14 = vld [vmem:[%s3274_s28] sm:$0xff] }
  0x3e   : > { %1007 = vmatpush.bf16.msra.mxu0 %v2906_v2  ;;  %v2909_v13 = vld [vmem:[%s3723_s19 + $0x48] sm:$0xff]  ;;  %v904_v15 = vunpack.c.l.b16 %v869_v14  ;;  %v905_v16 = vunpack.c.h.b16 %v869_v14  ;;  %v2900_v17 = vld [vmem:[%s3723_s19] sm:$0xff] }
  0x3f   : > { %1020 = vmatpush.bf16.msra.mxu1 %v2914_v3  ;;  %v2908_v18 = vld [vmem:[%s3723_s19 + $0x40] sm:$0xff] }
  0x40   : > { %v906_v19 = vpack.c.b16 %v904_v15, %v904_v15  ;;  %v907_v20 = vpack.c.b16 %v905_v16, %v905_v16  ;;  %v902_v21 = vld [vmem:[%s3724_s6] sm:$0xff] }
  0x42   : > { %1008 = vmatpush.bf16.msra.mxu0 %v2905_v4 }
  0x43   : > { %1021 = vmatpush.bf16.msra.mxu1 %v2913_v5 }
  0x46   : > { %1009 = vmatpush.bf16.msra.mxu0 %v2904_v6 }
  0x47   : > { %1022 = vmatpush.bf16.msra.mxu1 %v2912_v7 }
  0x4a   : > { %1010 = vmatpush.bf16.msra.mxu0 %v2903_v8 }
  0x4b   : > { %1023 = vmatpush.bf16.msra.mxu1 %v2911_v9 }
  0x4e   : > { %1011 = vmatpush.bf16.msra.mxu0 %v2902_v10 }
  0x4f   : > { %1024 = vmatpush.bf16.msra.mxu1 %v2910_v11 }
  0x52   : > { %1012 = vmatpush.bf16.msra.mxu0 %v2901_v12 }
  0x53   : > { %1025 = vmatpush.bf16.msra.mxu1 %v2909_v13 }
  0x56   : > { %1013 = vmatpush.bf16.msra.mxu0 %v2900_v17 }
  0x57   : > { %1026 = vmatpush.bf16.msra.mxu1 %v2908_v18 }
  0x59   : > { %1014 = vmatmul.bf16.vlgmr.msra.gmra.mxu0 %v906_v19 }
  0x5a   : > { %1027 = vmatmul.bf16.vlgmr.msra.gmra.mxu1 %v907_v20 }
  0xd6   : > { %v1015_v22 = vpop.f32.mrf.mxu0 }
  0xd7   : > { %v1028_v23 = vpop.f32.mrf.mxu1  ;;  %v1016_v24 = vadd.f32 %v1015_v22, %v902_v21 }
  0xd9   : > { %v1029_v25 = vadd.f32 %v1028_v23, %v1016_v24 }
  0xdb   : > { %1032 = vst [vmem:[#allocation2] sm:$0xff] %v1029_v25 }
  0xde   : > { %v1017_v26 = vpop.f32.mrf.mxu0 }
  0xdf   : > { %v1030_v27 = vpop.f32.mrf.mxu1 }
  0xe0 PF: > { %v3131_v29 = vmov 128.0   ;;  %v2589_v30 = vld [vmem:[%s3290_s3 + $0xa8] sm:$0xf]  ;;  %v2938_v31 = vld [vmem:[%s3290_s3 + $0xb0] sm:$0xf0]  ;;  %s3725_s30 = sld [smem:[#allocation13_spill]]  ;;  %s3730_s17 = scalar_lea.vmem %s3673_s9, %s3269_s24 }
  0xe1   : > { %3065 = vrcp.f32 %v3131_v29  ;;  %v2937_v32 = vld [vmem:[%s3290_s3 + $0xac] sm:$0xf]  ;;  %v2590_v33 = vor.u32 %v2938_v31, %v2589_v30  ;;  %v2591_v34 = vld [vmem:[%s3290_s3 + $0xb4] sm:$0xf0]  ;;  %v2597_v35 = vld [vmem:[%s3290_s3 + $0xb0] sm:$0xf]  ;;  %s3731_s5 = scalar_lea.vmem %s3674_s10, %s3269_s24 }
  0xe2   : > { %v3402_v28 = vld [vmem:[#allocation2] sm:$0xff]  ;;  %v2939_v36 = vld [vmem:[%s3290_s3 + $0xb8] sm:$0xf0]  ;;  %v2594_v37 = vor.u32 %v2937_v32, %v2591_v34  ;;  %v2577_v49 = vld [vmem:[%s3290_s3 + $0x90] sm:$0xf]  ;;  %s3727_s22 = sld [smem:[#allocation14_spill]] }
  0xe3   : > { %1036 = vadd.xlane.f32.xlu0 %v3402_v28  ;;  %v2598_v38 = vor.u32 %v2939_v36, %v2597_v35  ;;  %1240 = vmatpush.bf16.msra.mxu0 %v2590_v33  ;;  %v2935_v50 = vld [vmem:[%s3290_s3 + $0x98] sm:$0xf0]  ;;  %v2934_v51 = vld [vmem:[%s3290_s3 + $0x94] sm:$0xf]  ;;  %v2579_v53 = vld [vmem:[%s3290_s3 + $0x9c] sm:$0xf0] }
  0xe4   : > { %1253 = vmatpush.bf16.msra.mxu1 %v2594_v37  ;;  %v2578_v52 = vor.u32 %v2935_v50, %v2577_v49  ;;  %v2585_v54 = vld [vmem:[%s3290_s3 + $0x98] sm:$0xf]  ;;  %v2936_v55 = vld [vmem:[%s3290_s3 + $0xa0] sm:$0xf0]  ;;  %v2582_v56 = vor.u32 %v2934_v51, %v2579_v53  ;;  %v2931_v60 = vld [vmem:[%s3290_s3 + $0x7c] sm:$0xf] }
  0xe5   : > { %1266 = vmatpush.bf16.msra.mxu2 %v2598_v38  ;;  %v2586_v57 = vor.u32 %v2936_v55, %v2585_v54  ;;  %v2565_v58 = vld [vmem:[%s3290_s3 + $0x78] sm:$0xf]  ;;  %v2932_v59 = vld [vmem:[%s3290_s3 + $0x80] sm:$0xf0]  ;;  %v2567_v62 = vld [vmem:[%s3290_s3 + $0x84] sm:$0xf0] }
  0xe6   : > { %v2566_v61 = vor.u32 %v2932_v59, %v2565_v58  ;;  %v2573_v63 = vld [vmem:[%s3290_s3 + $0x80] sm:$0xf]  ;;  %v2933_v0 = vld [vmem:[%s3290_s3 + $0x88] sm:$0xf0]  ;;  %v2570_v1 = vor.u32 %v2931_v60, %v2567_v62  ;;  %v2928_v5 = vld [vmem:[%s3290_s3 + $0x64] sm:$0xf]  ;;  %s3726_s13 = scalar_lea.vmem %s3725_s30, %s3269_s24 }
  0xe7   : > { %v3066_v39 = vpop.eup %3065  ;;  %1241 = vmatpush.bf16.msra.mxu0 %v2578_v52  ;;  %v2574_v2 = vor.u32 %v2933_v0, %v2573_v63  ;;  %v2553_v3 = vld [vmem:[%s3290_s3 + $0x60] sm:$0xf]  ;;  %v2929_v4 = vld [vmem:[%s3290_s3 + $0x68] sm:$0xf0]  ;;  %v2555_v7 = vld [vmem:[%s3290_s3 + $0x6c] sm:$0xf0] }
  0xe8   : > { %v1039_v40 = vmul.f32 128.0, %v3066_v39  ;;  %vm1043_vm0 = vweird.f32 %v3066_v39  ;;  %1254 = vmatpush.bf16.msra.mxu1 %v2582_v56  ;;  %v2554_v6 = vor.u32 %v2929_v4, %v2553_v3  ;;  %v2561_v8 = vld [vmem:[%s3290_s3 + $0x68] sm:$0xf]  ;;  %v2930_v9 = vld [vmem:[%s3290_s3 + $0x70] sm:$0xf0]  ;;  %v2558_v10 = vor.u32 %v2928_v5, %v2555_v7  ;;  %s3728_s18 = scalar_lea.vmem %s3727_s22, %s3269_s24  ;;  %s3132_s1 = smov 64  }
  0xe9   : > { %1267 = vmatpush.bf16.msra.mxu2 %v2586_v57  ;;  %v2562_v11 = vor.u32 %v2930_v9, %v2561_v8  ;;  %v2541_v12 = vld [vmem:[%s3290_s3 + $0x48] sm:$0xf]  ;;  %v2926_v13 = vld [vmem:[%s3290_s3 + $0x50] sm:$0xf0]  ;;  %v2925_v14 = vld [vmem:[%s3290_s3 + $0x4c] sm:$0xf] }
  0xea   : > { %v1040_v41 = vsub.f32 1.0, %v1039_v40  ;;  %v2542_v15 = vor.u32 %v2926_v13, %v2541_v12  ;;  %v2543_v16 = vld [vmem:[%s3290_s3 + $0x54] sm:$0xf0]  ;;  %v2549_v17 = vld [vmem:[%s3290_s3 + $0x50] sm:$0xf]  ;;  %vm1288_vm4 = vcmask 523264  }
  0xeb   : > { %1242 = vmatpush.bf16.msra.mxu0 %v2566_v61  ;;  %v2927_v18 = vld [vmem:[%s3290_s3 + $0x58] sm:$0xf0]  ;;  %v2546_v19 = vor.u32 %v2925_v14, %v2543_v16  ;;  %v2529_v21 = vld [vmem:[%s3290_s3 + $0x30] sm:$0xf]  ;;  %v2922_v23 = vld [vmem:[%s3290_s3 + $0x34] sm:$0xf] }
  0xec   : > { %v1041_v42 = vmul.f32 %v3066_v39, %v1040_v41  ;;  %1255 = vmatpush.bf16.msra.mxu1 %v2570_v1  ;;  %v2550_v20 = vor.u32 %v2927_v18, %v2549_v17  ;;  %v2923_v22 = vld [vmem:[%s3290_s3 + $0x38] sm:$0xf0]  ;;  %v2531_v25 = vld [vmem:[%s3290_s3 + $0x3c] sm:$0xf0]  ;;  %v2537_v26 = vld [vmem:[%s3290_s3 + $0x38] sm:$0xf] }
  0xed   : > { %1268 = vmatpush.bf16.msra.mxu2 %v2574_v2  ;;  %v2530_v24 = vor.u32 %v2923_v22, %v2529_v21  ;;  %v2924_v27 = vld [vmem:[%s3290_s3 + $0x40] sm:$0xf0]  ;;  %v2534_v29 = vor.u32 %v2922_v23, %v2531_v25  ;;  %v2517_v31 = vld [vmem:[%s3290_s3 + $0x18] sm:$0xf]  ;;  %v2919_v33 = vld [vmem:[%s3290_s3 + $0x1c] sm:$0xf] }
  0xee   : > { %v1042_v43 = vadd.f32 %v3066_v39, %v1041_v42  ;;  %v2538_v30 = vor.u32 %v2924_v27, %v2537_v26  ;;  %v2920_v32 = vld [vmem:[%s3290_s3 + $0x20] sm:$0xf0]  ;;  %v2519_v35 = vld [vmem:[%s3290_s3 + $0x24] sm:$0xf0]  ;;  %v2525_v36 = vld [vmem:[%s3290_s3 + $0x20] sm:$0xf] }
  0xef   : > { %1243 = vmatpush.bf16.msra.mxu0 %v2554_v6  ;;  %v2518_v34 = vor.u32 %v2920_v32, %v2517_v31  ;;  %v2921_v37 = vld [vmem:[%s3290_s3 + $0x28] sm:$0xf0]  ;;  %v2522_v38 = vor.u32 %v2919_v33, %v2519_v35  ;;  %v2505_v40 = vld [vmem:[%s3290_s3] sm:$0xf]  ;;  %v2916_v42 = vld [vmem:[%s3290_s3 + $0x4] sm:$0xf]  ;;  %v1281_v31 = vlaneseq }
  0xf0   : > { %v3411_v44 = vsel %vm1043_vm0, %v3066_v39, %v1042_v43  ;;  %1256 = vmatpush.bf16.msra.mxu1 %v2558_v10  ;;  %v2526_v39 = vor.u32 %v2921_v37, %v2525_v36  ;;  %v2917_v41 = vld [vmem:[%s3290_s3 + $0x8] sm:$0xf0]  ;;  %v3057_v60 = vld [vmem:[%s3726_s13] ss:$0 sm:$0xff]  ;;  %vm1324_vm5 = vcmask 1043456   ;;  %vm1308_vm7 = vcmask 64512  }
  0xf1   : > { %1269 = vmatpush.bf16.msra.mxu2 %v2562_v11  ;;  %v2506_v43 = vor.u32 %v2917_v41, %v2505_v40  ;;  %v3058_v63 = vld [vmem:[%s3728_s18] ss:$0 sm:$0xff]  ;;  %v1282_v32 = vand.u32 127, %v1281_v31  ;;  %v3133_v33 = vmov -1e+30   ;;  %s3733_s12 = sld [smem:[#allocation9_spill]] }
  0xf2   : > { %v1104_v3 = vld [vmem:[%s3300_s20] sm:$0x7]  ;;  %s3736_s18 = sld [smem:[#allocation3_spill]] }
  0xf3   : > { %1244 = vmatpush.bf16.msra.mxu0 %v2542_v15  ;;  %v1106_v4 = vperm.slane %v1104_v3, 0  ;;  %v1107_v5 = vperm.slane %v1104_v3, 1  ;;  %vm1283_vm6 = vcmp.lt.s32.totalorder %v1282_v32, 5 }
  0xf4   : > { %1257 = vmatpush.bf16.msra.mxu1 %v2546_v19 }
  0xf5   : > { %1270 = vmatpush.bf16.msra.mxu2 %v2550_v20 }
  0xf7   : > { %1245 = vmatpush.bf16.msra.mxu0 %v2530_v24 }
  0xf8   : > { %1258 = vmatpush.bf16.msra.mxu1 %v2534_v29  ;;  %p2891_p10 = scmp.lt.s32.totalorder %s3736_s18, 2 }
  0xf9   : > { %1271 = vmatpush.bf16.msra.mxu2 %v2538_v30  ;;  %s3738_s29 = sld [smem:[#allocation23_spill]] (!%p2891_p10) }
  0xfb   : > { %1246 = vmatpush.bf16.msra.mxu0 %v2518_v34  ;;  %v1284_v34 = vsel %vm1283_vm6, 0.0, %v3133_v33  ;;  %v2977_v33 = vld [vmem:[%s3322_s2 + $0xec] sm:$0xf] }
  0xfc   : > { %1259 = vmatpush.bf16.msra.mxu1 %v2522_v38 }
  0xfd   : > { %1272 = vmatpush.bf16.msra.mxu2 %v2526_v39 }
  0xff   : > { %1247 = vmatpush.bf16.msra.mxu0 %v2506_v43 }
 0x156   : > { %v1037_v45 = vpop.xlane.xlu0 %1036 }
 0x157   : > { %v1045_v46 = vmul.f32 %v3411_v44, %v1037_v45  ;;  %v2507_v45 = vld [vmem:[%s3290_s3 + $0xc] sm:$0xf0] }
 0x158   : > { %v2510_v49 = vor.u32 %v2916_v42, %v2507_v45 }
 0x159   : > { %v3415_v47 = vsub.f32 %v3402_v28, %v1045_v46  ;;  %v2513_v46 = vld [vmem:[%s3290_s3 + $0x8] sm:$0xf] }
 0x15a   : > { %1260 = vmatpush.bf16.msra.mxu1 %v2510_v49 }
 0x15b   : > { %v1047_v48 = vmul.f32 %v3415_v47, %v3415_v47 }
 0x15d   : > { %1048 = vadd.xlane.f32.xlu0 %v1047_v48  ;;  %v2918_v48 = vld [vmem:[%s3290_s3 + $0x10] sm:$0xf0]  ;;  %s3732_s3 = scalar_lea.vmem %s3675_s11, %s3269_s24 }
 0x15e   : > { %v2514_v50 = vor.u32 %v2918_v48, %v2513_v46 }
 0x160   : > { %1273 = vmatpush.bf16.msra.mxu2 %v2514_v50 }
 0x1d0   : > { %v1049_v51 = vpop.xlane.xlu0 %1048 }
 0x1d1   : > { %v1050_v52 = vmul.f32 %v1049_v51, %v3411_v44 }
 0x1d3   : > { %v1051_v53 = vadd.f32 1e-06, %v1050_v52 }
 0x1d5   : > { %3067 = vrsqrt.f32 %v1051_v53  ;;  %vm1058_vm2 = vweird.f32 %v1051_v53 }
 0x1db   : > { %v3068_v54 = vpop.eup %3067 }
 0x1dc   : > { %v1053_v55 = vmul.f32 %v3068_v54, %v1051_v53  ;;  %vm1059_vm1 = vweird.f32 %v3068_v54 }
 0x1dd   : > { %vm1060_vm3 = vmor %vm1058_vm2, %vm1059_vm1 }
 0x1de   : > { %v1054_v56 = vmul.f32 %v3068_v54, %v1053_v55 }
 0x1e0   : > { %v1055_v57 = vmul.f32 0.5, %v1054_v56 }
 0x1e2   : > { %v1056_v58 = vsub.f32 1.5, %v1055_v57 }
 0x1e4   : > { %v1057_v59 = vmul.f32 %v3068_v54, %v1056_v58 }
 0x1e6   : > { %v1061_v61 = vsel %vm1060_vm3, %v3068_v54, %v1057_v59 }
 0x1e7   : > { %v1062_v62 = vmul.f32 %v1061_v61, %v3415_v47  ;;  %v1108_v47 = vperm.slane %v1104_v3, 2  ;;  %v2945_v3 = vld [vmem:[%s3295_s27 + $0x28] sm:$0xff] }
 0x1e9   : > { %v1066_v0 = vmul.f32 %v3057_v60, %v1062_v62 }
 0x1eb   : > { %v1070_v1 = vadd.f32 %v3058_v63, %v1066_v0 }
 0x1ed   : > { %v1071_v2 = vpack.c.bf16 %v1070_v1, %v1070_v1  ;;  %v2947_v1 = vld [vmem:[%s3295_s27 + $0x38] sm:$0xff] }
 0x1ee   : > { %1481 = vmatpush.bf16.msrb.mxu1 %v2947_v1  ;;  %v2701_v1 = vld [vmem:[%s3322_s2 + $0x80] sm:$0xf] }
 0x1ef   : > { %1248 = vmatmul.bf16.vlgmr.msra.gmra.mxu0 %v1071_v2  ;;  %1261 = vmatmul.bf16.vlgmr.msra.gmra.mxu1 %v1071_v2 }
 0x1f0   : > { %1274 = vmatmul.bf16.vlgmr.msra.gmra.mxu2 %v1071_v2  ;;  %v2946_v2 = vld [vmem:[%s3295_s27 + $0x30] sm:$0xff] }
 0x1f2   : > { %1482 = vmatpush.bf16.msrb.mxu1 %v2946_v2  ;;  %v2966_v2 = vld [vmem:[%s3322_s2 + $0x8c] sm:$0xf0] }
 0x1f6   : > { %1483 = vmatpush.bf16.msrb.mxu1 %v2945_v3  ;;  %v2964_v3 = vld [vmem:[%s3322_s2 + $0x84] sm:$0xf] }
 0x26c   : > { %v1249_v6 = vpop.f32.mrf.mxu0  ;;  %v1262_v7 = vpop.f32.mrf.mxu1 }
 0x26d   : > { %v1250_v8 = vadd.f32 %v1249_v6, %v1106_v4  ;;  %v1263_v9 = vadd.f32 %v1262_v7, %v1107_v5  ;;  %v2944_v4 = vld [vmem:[%s3295_s27 + $0x20] sm:$0xff]  ;;  %v2943_v5 = vld [vmem:[%s3295_s27 + $0x18] sm:$0xff]  ;;  %v2942_v6 = vld [vmem:[%s3295_s27 + $0x10] sm:$0xff] }
 0x26e   : > { %1484 = vmatpush.bf16.msrb.mxu1 %v2944_v4  ;;  %v2941_v7 = vld [vmem:[%s3295_s27 + $0x8] sm:$0xff]  ;;  %v2702_v4 = vor.u32 %v2966_v2, %v2701_v1  ;;  %v3003_v1 = vld [vmem:[%s3333_s16 + $0xb8] sm:$0xff] }
 0x26f   : > { %v1279_v10 = vpack.c.bf16 %v1263_v9, %v1250_v8  ;;  %v3011_v2 = vld [vmem:[%s3333_s16 + $0xf8] sm:$0xff] }
 0x271   : > { %v1286_v11 = vunpack.c.h.b16 %v1279_v10  ;;  %v1342_v19 = vunpack.c.l.b16 %v1279_v10 }
 0x272   : > { %1485 = vmatpush.bf16.msrb.mxu1 %v2943_v5  ;;  %v2703_v5 = vld [vmem:[%s3322_s2 + $0x90] sm:$0xf0] }
 0x273   : > { %v1275_v12 = vpop.f32.mrf.mxu2  ;;  %v1287_v13 = vpack.c.b16 %v1286_v11, %v1286_v11  ;;  %v1343_v22 = vpack.c.b16 %v1342_v19, %v1342_v19 }
 0x274   : > { %v1276_v14 = vadd.f32 %v1275_v12, %v1108_v47  ;;  %v1251_v15 = vpop.f32.mrf.mxu0  ;;  %v1264_v16 = vpop.f32.mrf.mxu1 }
 0x275   : > { %1346 = vrot.lane.b32.xlu2 %v1287_v13, %s3132_s1  ;;  %v1293_v17 = vsel %vm1288_vm4, %v1287_v13, 0 }
 0x276   : > { %v1280_v18 = vpack.c.bf16 %v1276_v14, %v1276_v14  ;;  %1302 = vmatpush.bf16.xpose.msra.mxu3 %v1293_v17  ;;  %1486 = vmatpush.bf16.msrb.mxu1 %v2942_v6  ;;  %v3060_v17 = vld [vmem:[%s3730_s17] ss:$0 sm:$0xff]  ;;  %v2709_v6 = vld [vmem:[%s3322_s2 + $0x88] sm:$0xf] }
 0x278   : > { %v1326_v20 = vsel %vm1324_vm5, %v1280_v18, 0  ;;  %v1380_v23 = vunpack.c.l.b16 %v1280_v18 }
 0x27a   : > { %v1381_v24 = vpack.c.b16 %v1380_v23, %v1380_v23  ;;  %1487 = vmatpush.bf16.msrb.mxu1 %v2941_v7  ;;  %v2749_v23 = vld [vmem:[%s3322_s2 + $0xe0] sm:$0xf]  ;;  %v2967_v7 = vld [vmem:[%s3322_s2 + $0x94] sm:$0xf0] }
 0x27b   : > { %v1277_v21 = vpop.f32.mrf.mxu2 }
 0x27d   : > { %1344 = vrot.lane.b32.xlu2 %v1343_v22, %s3132_s1  ;;  %2599 = vmatmul.msk.bf16.vlgmr.msra.gmra.mxu3 %vm1288_vm4, %v1279_v10  ;;  %v2940_v10 = vld [vmem:[%s3295_s27] sm:$0xff]  ;;  %s3729_s27 = scalar_lea.vmem %s3672_s8, %s3269_s24 }
 0x27e   : > { %1335 = vmatpush.bf16.msrb.mxu3 %v1326_v20  ;;  %1488 = vmatpush.bf16.msrb.mxu1 %v2940_v10  ;;  %v3059_v16 = vld [vmem:[%s3729_s27] ss:$0 sm:$0xff]  ;;  %v2965_v10 = vld [vmem:[%s3322_s2 + $0x8c] sm:$0xf] }
 0x285   : > { %1382 = vrot.lane.b32.xlu2 %v1381_v24, %s3132_s1  ;;  %v2978_v24 = vld [vmem:[%s3322_s2 + $0xec] sm:$0xf0] }
 0x2cf   : > { %v1347_v25 = vpop.permute.xlu2 %1346 }
 0x2d0   : > { %v1352_v26 = vsel %vm1288_vm4, %v1347_v25, 0  ;;  %v2976_v25 = vld [vmem:[%s3322_s2 + $0xe4] sm:$0xf] }
 0x2d1   : > { %1361 = vmatpush.bf16.xpose.msra.mxu3 %v1352_v26  ;;  %v2750_v26 = vor.u32 %v2978_v24, %v2749_v23  ;;  %v2695_v23 = vld [vmem:[%s3322_s2 + $0x78] sm:$0xf0] }
 0x2d3   : > { %1733 = vmatpush.bf16.msrb.mxu2 %v2750_v26  ;;  %v2958_v26 = vld [vmem:[%s3322_s2 + $0x4c] sm:$0xf0] }
 0x2d7   : > { %v1345_v27 = vpop.permute.xlu2 %1344 }
 0x2df   : > { %v1383_v29 = vpop.permute.xlu2 %1382 }
 0x2e0   : > { %v1388_v30 = vsel %vm1324_vm5, %v1383_v29, 0  ;;  %v2757_v29 = vld [vmem:[%s3322_s2 + $0xe8] sm:$0xf] }
 0x2e1   : > { %1397 = vmatpush.bf16.msrb.mxu0 %v1388_v30  ;;  %v2979_v30 = vld [vmem:[%s3322_s2 + $0xf4] sm:$0xf0] }
 0x2e2   : > { %v2758_v32 = vor.u32 %v2979_v30, %v2757_v29  ;;  %v2671_v30 = vld [vmem:[%s3322_s2 + $0x50] sm:$0xf0] }
 0x2e5   : > { %1759 = vmatpush.bf16.msra.mxu0 %v2758_v32  ;;  %v2959_v32 = vld [vmem:[%s3322_s2 + $0x54] sm:$0xf0] }
 0x300   : > { %v1304_v35 = vpop.f32.mrf.mxu3 }
 0x301   : > { %v1305_v36 = vadd.f32 %v1304_v35, %v1284_v34 }
 0x303   : > { %v1309_v37 = vsel %vm1308_vm7, %v1305_v36, -inf }
 0x304   : > { %1310 = vmax.xlane.f32.xlu1 %v1309_v37 }
 0x308   : > { %v1306_v38 = vpop.f32.mrf.mxu3 }
 0x377   : > { %v1311_v39 = vpop.xlane.xlu1 %1310 }
 0x378   : > { %v1312_v40 = vsub.f32 %v1305_v36, %v1311_v39  ;;  %v2733_v39 = vld [vmem:[%s3322_s2 + $0xc0] sm:$0xf] }
 0x37a   : > { %v1313_v41 = vmul.f32 1.442695, %v1312_v40  ;;  %v2974_v40 = vld [vmem:[%s3322_s2 + $0xcc] sm:$0xf0] }
 0x37c   : > { %3069 = vpow2.f32 %v1313_v41  ;;  %v2972_v41 = vld [vmem:[%s3322_s2 + $0xc4] sm:$0xf] }
 0x382   : > { %v3070_v42 = vpop.eup %3069 }
 0x383   : > { %v1315_v43 = vsel %vm1308_vm7, %v3070_v42, 0.0 }
 0x384   : > { %1316 = vadd.xlane.f32.xlu1 %v1315_v43  ;;  %v2735_v43 = vld [vmem:[%s3322_s2 + $0xd0] sm:$0xf0] }
 0x3f7   : > { %v1317_v45 = vpop.xlane.xlu1 %1316 }
 0x3f8   : > { %3071 = vrcp.f32 %v1317_v45  ;;  %v2741_v45 = vld [vmem:[%s3322_s2 + $0xc8] sm:$0xf] }
 0x3fe   : > { %v3072_v46 = vpop.eup %3071 }
 0x3ff   : > { %v1319_v48 = vmul.f32 %v3072_v46, %v3070_v42  ;;  %v2734_v42 = vor.u32 %v2974_v40, %v2733_v39  ;;  %v2975_v46 = vld [vmem:[%s3322_s2 + $0xd4] sm:$0xf0]  ;;  %v2954_v39 = vld [vmem:[%s3322_s2 + $0x2c] sm:$0xf0]  ;;  %v2952_v40 = vld [vmem:[%s3322_s2 + $0x24] sm:$0xf] }
 0x401   : > { %v1320_v49 = vpack.c.bf16 %v1319_v48, %v1319_v48  ;;  %v2738_v48 = vor.u32 %v2972_v41, %v2735_v43  ;;  %1734 = vmatpush.bf16.msrb.mxu2 %v2734_v42  ;;  %v2655_v42 = vld [vmem:[%s3322_s2 + $0x30] sm:$0xf0]  ;;  %v2661_v43 = vld [vmem:[%s3322_s2 + $0x28] sm:$0xf] }
 0x403   : > { %2600 = vmatmul.msk.bf16.vlgmr.msrb.gmra.mxu3 %vm1308_vm7, %v1320_v49  ;;  %v2742_v49 = vor.u32 %v2975_v46, %v2741_v45  ;;  %v2955_v45 = vld [vmem:[%s3322_s2 + $0x34] sm:$0xf0]  ;;  %v2658_v46 = vor.u32 %v2952_v40, %v2655_v42  ;;  %v2982_v40 = vld [vmem:[%s3333_s16 + $0x10] sm:$0xff]  ;;  %v2996_v42 = vld [vmem:[%s3333_s16 + $0x80] sm:$0xff] }
 0x405   : > { %1760 = vmatpush.bf16.msra.mxu0 %v2742_v49  ;;  %v2953_v49 = vld [vmem:[%s3322_s2 + $0x2c] sm:$0xf] }
 0x413   : > { %2601 = vmatmul.msk.bf16.vlgmr.msra.gmra.mxu3 %vm1288_vm4, %v1345_v27  ;;  %v2751_v27 = vld [vmem:[%s3322_s2 + $0xf0] sm:$0xf0] }
 0x414   : > { %v2754_v31 = vor.u32 %v2976_v25, %v2751_v27  ;;  %v2669_v25 = vld [vmem:[%s3322_s2 + $0x40] sm:$0xf]  ;;  %v2956_v27 = vld [vmem:[%s3322_s2 + $0x44] sm:$0xf] }
 0x415   : > { %v2670_v29 = vor.u32 %v2958_v26, %v2669_v25  ;;  %v3000_v25 = vld [vmem:[%s3333_s16 + $0xa0] sm:$0xff] }
 0x416   : > { %1746 = vmatpush.bf16.msrb.mxu3 %v2754_v31  ;;  %v2677_v31 = vld [vmem:[%s3322_s2 + $0x48] sm:$0xf]  ;;  %v3008_v26 = vld [vmem:[%s3333_s16 + $0xe0] sm:$0xff] }
 0x41a   : > { %1747 = vmatpush.bf16.msrb.mxu3 %v2738_v48  ;;  %v2662_v48 = vor.u32 %v2955_v45, %v2661_v43  ;;  %v3004_v43 = vld [vmem:[%s3333_s16 + $0xc0] sm:$0xff]  ;;  %v2981_v45 = vld [vmem:[%s3333_s16 + $0x8] sm:$0xff] }
 0x486   : > { %v1337_v50 = vpop.f32.mrf.mxu3 }
 0x487   : > { %v1341_v13 = vpack.c.bf16 %v1337_v50, %v1337_v50  ;;  %v2973_v50 = vld [vmem:[%s3322_s2 + $0xcc] sm:$0xf] }
 0x48e   : > { %v1339_v51 = vpop.f32.mrf.mxu3 }
 0x48f   : > { %v2743_v51 = vld [vmem:[%s3322_s2 + $0xd8] sm:$0xf0] }
 0x496   : > { %v1363_v52 = vpop.f32.mrf.mxu3 }
 0x497   : > { %v1364_v53 = vadd.f32 %v1363_v52, %v1284_v34  ;;  %v2759_v34 = vld [vmem:[%s3322_s2 + $0xf8] sm:$0xf0]  ;;  %v2746_v52 = vor.u32 %v2973_v50, %v2743_v51  ;;  %v2637_v51 = vld [vmem:[%s3322_s2] sm:$0xf] }
 0x498   : > { %v2663_v50 = vld [vmem:[%s3322_s2 + $0x38] sm:$0xf0] }
 0x499   : > { %v1367_v54 = vsel %vm1308_vm7, %v1364_v53, -inf }
 0x49a   : > { %1368 = vmax.xlane.f32.xlu0 %v1367_v54  ;;  %v2970_v54 = vld [vmem:[%s3322_s2 + $0xac] sm:$0xf0] }
 0x49e   : > { %v1365_v55 = vpop.f32.mrf.mxu3 }
 0x49f   : > { %v2968_v55 = vld [vmem:[%s3322_s2 + $0xa4] sm:$0xf] }
 0x50d   : > { %v1369_v56 = vpop.xlane.xlu0 %1368 }
 0x50e   : > { %v1370_v57 = vsub.f32 %v1364_v53, %v1369_v56  ;;  %v2717_v53 = vld [vmem:[%s3322_s2 + $0xa0] sm:$0xf] }
 0x50f   : > { %v2718_v56 = vor.u32 %v2970_v54, %v2717_v53  ;;  %v2950_v53 = vld [vmem:[%s3322_s2 + $0xc] sm:$0xf0]  ;;  %v2948_v54 = vld [vmem:[%s3322_s2 + $0x4] sm:$0xf] }
 0x510   : > { %v1371_v58 = vmul.f32 1.442695, %v1370_v57  ;;  %v2719_v57 = vld [vmem:[%s3322_s2 + $0xb0] sm:$0xf0] }
 0x511   : > { %1735 = vmatpush.bf16.msrb.mxu2 %v2718_v56  ;;  %v2638_v56 = vor.u32 %v2950_v53, %v2637_v51  ;;  %v2980_v51 = vld [vmem:[%s3333_s16] sm:$0xff] }
 0x512   : > { %3073 = vpow2.f32 %v1371_v58  ;;  %v2725_v58 = vld [vmem:[%s3322_s2 + $0xa8] sm:$0xf] }
 0x515   : > { %1736 = vmatpush.bf16.msrb.mxu2 %v2702_v4 }
 0x518   : > { %v3074_v59 = vpop.eup %3073 }
 0x519   : > { %v1373_v60 = vsel %vm1308_vm7, %v3074_v59, 0.0 }
 0x51a   : > { %1374 = vadd.xlane.f32.xlu1 %v1373_v60  ;;  %v2722_v60 = vor.u32 %v2968_v55, %v2719_v57  ;;  %v2639_v55 = vld [vmem:[%s3322_s2 + $0x10] sm:$0xf0] }
 0x51b   : > { %v2642_v57 = vor.u32 %v2948_v54, %v2639_v55 }
 0x51c   : > { %1748 = vmatpush.bf16.msrb.mxu3 %v2722_v60  ;;  %v2949_v60 = vld [vmem:[%s3322_s2 + $0xc] sm:$0xf] }
 0x58d   : > { %v1375_v61 = vpop.xlane.xlu1 %1374 }
 0x58e   : > { %3075 = vrcp.f32 %v1375_v61 }
 0x594   : > { %v3076_v62 = vpop.eup %3075 }
 0x595   : > { %v1377_v63 = vmul.f32 %v3076_v62, %v3074_v59  ;;  %v2971_v59 = vld [vmem:[%s3322_s2 + $0xb4] sm:$0xf0]  ;;  %v2969_v62 = vld [vmem:[%s3322_s2 + $0xac] sm:$0xf] }
 0x596   : > { %v2726_v61 = vor.u32 %v2971_v59, %v2725_v58  ;;  %v2645_v58 = vld [vmem:[%s3322_s2 + $0x8] sm:$0xf]  ;;  %v2951_v59 = vld [vmem:[%s3322_s2 + $0x14] sm:$0xf0] }
 0x597   : > { %v1378_v0 = vpack.c.bf16 %v1377_v63, %v1377_v63  ;;  %v2727_v63 = vld [vmem:[%s3322_s2 + $0xb8] sm:$0xf0] }
 0x598   : > { %1761 = vmatpush.bf16.msra.mxu0 %v2726_v61  ;;  %v2646_v61 = vor.u32 %v2951_v59, %v2645_v58 }
 0x599   : > { %2602 = vmatmul.msk.bf16.vlgmr.msrb.gmra.mxu0 %vm1308_vm7, %v1378_v0  ;;  %v2730_v0 = vor.u32 %v2969_v62, %v2727_v63  ;;  %v2647_v62 = vld [vmem:[%s3322_s2 + $0x18] sm:$0xf0] }
 0x59a   : > { %v2650_v63 = vor.u32 %v2949_v60, %v2647_v62 }
 0x616   : > { %v1399_v8 = vpop.f32.mrf.mxu0 }
 0x617   : > { %v1403_v9 = vpack.c.bf16 %v1399_v8, %v1399_v8  ;;  %v2706_v8 = vor.u32 %v2964_v3, %v2703_v5 }
 0x619   : > { %v1405_v47 = vunpack.c.l.b16 %v1403_v9  ;;  %v2710_v9 = vor.u32 %v2967_v7, %v2709_v6  ;;  %1749 = vmatpush.bf16.msrb.mxu3 %v2706_v8 }
 0x61b   : > { %v1406_v11 = vpack.c.b16 %v1405_v47, %v1405_v47  ;;  %v2711_v47 = vld [vmem:[%s3322_s2 + $0x98] sm:$0xf0]  ;;  %1762 = vmatpush.bf16.msra.mxu0 %v2710_v9 }
 0x61d   : > { %1407 = vrot.lane.b32.xlu0 %v1406_v11, %s3132_s1  ;;  %v2714_v11 = vor.u32 %v2965_v10, %v2711_v47  ;;  %v3061_v47 = vld [vmem:[%s3731_s5] ss:$0 sm:$0xff] }
 0x61e   : > { %v1401_v12 = vpop.f32.mrf.mxu0 }
 0x61f   : > { %v2685_v12 = vld [vmem:[%s3322_s2 + $0x60] sm:$0xf] }
 0x68f   : > { %v1408_v14 = vpop.permute.xlu0 %1407 }
 0x690   : > { %v1411_v15 = vsel %vm1288_vm4, %v1341_v13, %v1408_v14  ;;  %v2962_v13 = vld [vmem:[%s3322_s2 + $0x6c] sm:$0xf0]  ;;  %v2960_v14 = vld [vmem:[%s3322_s2 + $0x64] sm:$0xf] }
 0x691   : > { %1489 = vmatmul.bf16.vlgmr.msrb.gmra.mxu1 %v1411_v15  ;;  %v2686_v15 = vor.u32 %v2962_v13, %v2685_v12  ;;  %v3062_v13 = vld [vmem:[%s3732_s3] ss:$0 sm:$0xff] }
 0x693   : > { %1737 = vmatpush.bf16.msrb.mxu2 %v2686_v15 }
 0x697   : > { %1738 = vmatpush.bf16.msrb.mxu2 %v2670_v29  ;;  %v2993_v29 = vld [vmem:[%s3333_s16 + $0x68] sm:$0xff] }
 0x70e   : > { %v1490_v18 = vpop.f32.mrf.mxu1 }
 0x70f   : > { %v1491_v19 = vadd.f32 %v3059_v16, %v1490_v18  ;;  %v2687_v16 = vld [vmem:[%s3322_s2 + $0x70] sm:$0xf0]  ;;  %v2963_v18 = vld [vmem:[%s3322_s2 + $0x74] sm:$0xf0] }
 0x711   : > { %v1498_v20 = vmul.f32 %v3060_v17, %v1491_v19  ;;  %v2693_v17 = vld [vmem:[%s3322_s2 + $0x68] sm:$0xf]  ;;  %v2690_v19 = vor.u32 %v2960_v14, %v2687_v16 }
 0x713   : > { %v3510_v21 = vadd.f32 %v1498_v20, %v3402_v28  ;;  %v2762_v28 = vor.u32 %v2977_v33, %v2759_v34  ;;  %v2694_v20 = vor.u32 %v2963_v18, %v2693_v17  ;;  %1750 = vmatpush.bf16.msrb.mxu3 %v2690_v19  ;;  %v2674_v33 = vor.u32 %v2956_v27, %v2671_v30  ;;  %v3002_v17 = vld [vmem:[%s3333_s16 + $0xb0] sm:$0xff]  ;;  %v2995_v19 = vld [vmem:[%s3333_s16 + $0x78] sm:$0xff]  ;;  %v2985_v27 = vld [vmem:[%s3333_s16 + $0x28] sm:$0xff] }
 0x714   : > { %v2678_v34 = vor.u32 %v2959_v32, %v2677_v31  ;;  %v3010_v18 = vld [vmem:[%s3333_s16 + $0xf0] sm:$0xff]  ;;  %v2999_v30 = vld [vmem:[%s3333_s16 + $0x98] sm:$0xff]  ;;  %v2984_v32 = vld [vmem:[%s3333_s16 + $0x20] sm:$0xff] }
 0x715   : > { %1502 = vadd.xlane.f32.xlu1 %v3510_v21  ;;  %1772 = vmatpush.bf16.msra.mxu1 %v2762_v28  ;;  %v2957_v28 = vld [vmem:[%s3322_s2 + $0x4c] sm:$0xf]  ;;  %v3007_v31 = vld [vmem:[%s3333_s16 + $0xd8] sm:$0xff] }
 0x716   : > { %v1492_v22 = vpop.f32.mrf.mxu1  ;;  %1763 = vmatpush.bf16.msra.mxu0 %v2694_v20  ;;  %v3001_v20 = vld [vmem:[%s3333_s16 + $0xa8] sm:$0xff] }
 0x717   : > { %v2961_v22 = vld [vmem:[%s3322_s2 + $0x6c] sm:$0xf]  ;;  %1751 = vmatpush.bf16.msrb.mxu3 %v2674_v33  ;;  %v2992_v33 = vld [vmem:[%s3333_s16 + $0x60] sm:$0xff] }
 0x718   : > { %v2698_v24 = vor.u32 %v2961_v22, %v2695_v23  ;;  %v3009_v22 = vld [vmem:[%s3333_s16 + $0xe8] sm:$0xff]  ;;  %v2986_v23 = vld [vmem:[%s3333_s16 + $0x30] sm:$0xff] }
 0x719   : > { %1773 = vmatpush.bf16.msra.mxu1 %v2746_v52  ;;  %v2666_v52 = vor.u32 %v2953_v49, %v2663_v50 }
 0x71a   : > { %1764 = vmatpush.bf16.msra.mxu0 %v2678_v34  ;;  %v2998_v34 = vld [vmem:[%s3333_s16 + $0x90] sm:$0xff] }
 0x71b   : > { %1752 = vmatpush.bf16.msrb.mxu3 %v2658_v46  ;;  %v2989_v46 = vld [vmem:[%s3333_s16 + $0x48] sm:$0xff] }
 0x71d   : > { %1774 = vmatpush.bf16.msra.mxu1 %v2730_v0 }
 0x71e   : > { %1765 = vmatpush.bf16.msra.mxu0 %v2662_v48  ;;  %v1563_v48 = vld [vmem:[%s3733_s12] sm:$0xf] }
 0x71f   : > { %1753 = vmatpush.bf16.msrb.mxu3 %v2642_v57  ;;  %v1567_v49 = vperm.slane %v1563_v48, 2  ;;  %v1568_v50 = vperm.slane %v1563_v48, 3  ;;  %v1565_v57 = vperm.slane %v1563_v48, 0  ;;  %v1566_v58 = vperm.slane %v1563_v48, 1  ;;  %v3063_v48 = vld [vmem:[%s846_s26] ss:$0 sm:$0xff] }
 0x721   : > { %1775 = vmatpush.bf16.msra.mxu1 %v2714_v11 }
 0x722   : > { %1766 = vmatpush.bf16.msra.mxu0 %v2646_v61 }
 0x723   : > { %2098 = vmatpush.bf16.msra.mxu3 %v2995_v19 }
 0x725   : > { %1776 = vmatpush.bf16.msra.mxu1 %v2698_v24  ;;  %v2994_v24 = vld [vmem:[%s3333_s16 + $0x70] sm:$0xff] }
 0x726   : > { %2111 = vmatpush.bf16.msrb.mxu0 %v3003_v1 }
 0x727   : > { %2099 = vmatpush.bf16.msra.mxu3 %v2994_v24 }
 0x72a   : > { %2112 = vmatpush.bf16.msrb.mxu0 %v3002_v17 }
 0x72b   : > { %2100 = vmatpush.bf16.msra.mxu3 %v2993_v29 }
 0x72e   : > { %2113 = vmatpush.bf16.msrb.mxu0 %v3001_v20 }
 0x72f   : > { %2101 = vmatpush.bf16.msra.mxu3 %v2992_v33 }
 0x732   : > { %2114 = vmatpush.bf16.msrb.mxu0 %v3000_v25 }
 0x736   : > { %2115 = vmatpush.bf16.msrb.mxu0 %v2999_v30 }
 0x73a   : > { %2116 = vmatpush.bf16.msrb.mxu0 %v2998_v34 }
 0x788   : > { %v1503_v35 = vpop.xlane.xlu1 %1502 }
 0x789   : > { %v1504_v36 = vmul.f32 %v1503_v35, %v3411_v44  ;;  %v2679_v35 = vld [vmem:[%s3322_s2 + $0x58] sm:$0xf0] }
 0x78b   : > { %v3523_v37 = vsub.f32 %v3510_v21, %v1504_v36  ;;  %v2682_v36 = vor.u32 %v2957_v28, %v2679_v35  ;;  %v3006_v28 = vld [vmem:[%s3333_s16 + $0xd0] sm:$0xff]  ;;  %v2983_v35 = vld [vmem:[%s3333_s16 + $0x18] sm:$0xff] }
 0x78d   : > { %v1506_v38 = vmul.f32 %v3523_v37, %v3523_v37  ;;  %1777 = vmatpush.bf16.msra.mxu1 %v2682_v36  ;;  %v2991_v36 = vld [vmem:[%s3333_s16 + $0x58] sm:$0xff] }
 0x78e   : > { %2102 = vmatpush.bf16.msra.mxu3 %v2991_v36 }
 0x78f   : > { %1507 = vadd.xlane.f32.xlu2 %v1506_v38  ;;  %v2653_v38 = vld [vmem:[%s3322_s2 + $0x20] sm:$0xf] }
 0x790   : > { %v2654_v41 = vor.u32 %v2954_v39, %v2653_v38  ;;  %v2997_v38 = vld [vmem:[%s3333_s16 + $0x88] sm:$0xff] }
 0x791   : > { %1778 = vmatpush.bf16.msra.mxu1 %v2666_v52  ;;  %v3005_v39 = vld [vmem:[%s3333_s16 + $0xc8] sm:$0xff]  ;;  %2117 = vmatpush.bf16.msrb.mxu0 %v2997_v38  ;;  %v2988_v52 = vld [vmem:[%s3333_s16 + $0x40] sm:$0xff] }
 0x792   : > { %1739 = vmatpush.bf16.msrb.mxu2 %v2654_v41  ;;  %v2990_v41 = vld [vmem:[%s3333_s16 + $0x50] sm:$0xff] }
 0x793   : > { %2103 = vmatpush.bf16.msra.mxu3 %v2990_v41 }
 0x795   : > { %1779 = vmatpush.bf16.msra.mxu1 %v2650_v63  ;;  %2118 = vmatpush.bf16.msrb.mxu0 %v2996_v42 }
 0x796   : > { %1740 = vmatpush.bf16.msrb.mxu2 %v2638_v56 }
 0x797   : > { %2104 = vmatpush.bf16.msra.mxu3 %v2989_v46 }
 0x799   : > { %2124 = vmatpush.bf16.msrb.mxu1 %v3011_v2 }
 0x79b   : > { %2105 = vmatpush.bf16.msra.mxu3 %v2988_v52 }
 0x79d   : > { %2125 = vmatpush.bf16.msrb.mxu1 %v3010_v18 }
 0x7a1   : > { %2126 = vmatpush.bf16.msrb.mxu1 %v3009_v22 }
 0x7a5   : > { %2127 = vmatpush.bf16.msrb.mxu1 %v3008_v26 }
 0x7a9   : > { %2128 = vmatpush.bf16.msrb.mxu1 %v3007_v31 }
 0x7ad   : > { %2129 = vmatpush.bf16.msrb.mxu1 %v3006_v28 }
 0x7b1   : > { %2130 = vmatpush.bf16.msrb.mxu1 %v3005_v39 }
 0x7b5   : > { %2131 = vmatpush.bf16.msrb.mxu1 %v3004_v43 }
 0x802   : > { %v1508_v0 = vpop.xlane.xlu2 %1507 }
 0x803   : > { %v1509_v3 = vmul.f32 %v1508_v0, %v3411_v44 }
 0x805   : > { %v1510_v4 = vadd.f32 1e-06, %v1509_v3 }
 0x807   : > { %3077 = vrsqrt.f32 %v1510_v4  ;;  %vm1517_vm9 = vweird.f32 %v1510_v4 }
 0x80d   : > { %v3078_v5 = vpop.eup %3077 }
 0x80e   : > { %v1512_v6 = vmul.f32 %v3078_v5, %v1510_v4  ;;  %vm1518_vm8 = vweird.f32 %v3078_v5 }
 0x80f   : > { %vm1519_vm10 = vmor %vm1517_vm9, %vm1518_vm8 }
 0x810   : > { %v1513_v7 = vmul.f32 %v3078_v5, %v1512_v6 }
 0x812   : > { %v1514_v8 = vmul.f32 0.5, %v1513_v7 }
 0x814   : > { %v1515_v9 = vsub.f32 1.5, %v1514_v8 }
 0x816   : > { %v1516_v10 = vmul.f32 %v3078_v5, %v1515_v9 }
 0x818   : > { %v1520_v11 = vsel %vm1519_vm10, %v3078_v5, %v1516_v10 }
 0x819   : > { %v1521_v12 = vmul.f32 %v1520_v11, %v3523_v37  ;;  %v2987_v37 = vld [vmem:[%s3333_s16 + $0x38] sm:$0xff] }
 0x81a   : > { %2085 = vmatpush.bf16.msra.mxu2 %v2987_v37 }
 0x81b   : > { %v1525_v14 = vmul.f32 %v3061_v47, %v1521_v12 }
 0x81d   : > { %v1529_v15 = vadd.f32 %v3062_v13, %v1525_v14 }
 0x81e   : > { %2086 = vmatpush.bf16.msra.mxu2 %v2986_v23 }
 0x81f   : > { %v1530_v16 = vpack.c.bf16 %v1529_v15, %v1529_v15 }
 0x821   : > { %1741 = vmatmul.bf16.vlgmr.msrb.gmra.mxu2 %v1530_v16  ;;  %1754 = vmatmul.bf16.vlgmr.msrb.gmra.mxu3 %v1530_v16 }
 0x822   : > { %1767 = vmatmul.bf16.vlgmr.msra.gmra.mxu0 %v1530_v16  ;;  %1780 = vmatmul.bf16.vlgmr.msra.gmra.mxu1 %v1530_v16 }
 0x823   : > { %2087 = vmatpush.bf16.msra.mxu2 %v2985_v27 }
 0x827   : > { %2088 = vmatpush.bf16.msra.mxu2 %v2984_v32 }
 0x82b   : > { %2089 = vmatpush.bf16.msra.mxu2 %v2983_v35 }
 0x82f   : > { %2090 = vmatpush.bf16.msra.mxu2 %v2982_v40 }
 0x833   : > { %2091 = vmatpush.bf16.msra.mxu2 %v2981_v45 }
 0x837   : > { %2092 = vmatpush.bf16.msra.mxu2 %v2980_v51 }
 0x89f   : > { %v1768_v53 = vpop.f32.mrf.mxu0  ;;  %v1781_v54 = vpop.f32.mrf.mxu1 }
 0x8a0   : > { %v1769_v55 = vadd.f32 %v1768_v53, %v1567_v49  ;;  %v1782_v56 = vadd.f32 %v1781_v54, %v1568_v50 }
 0x8a2   : > { %v1787_v59 = vmul.f32 %v1769_v55, %v1769_v55  ;;  %v1788_v60 = vmul.f32 %v1782_v56, %v1782_v56 }
 0x8a4   : > { %v1791_v61 = vmul.f32 %v1787_v59, %v1769_v55  ;;  %v1792_v62 = vmul.f32 %v1788_v60, %v1782_v56  ;;  %v1742_v63 = vpop.f32.mrf.mxu2  ;;  %v1755_v0 = vpop.f32.mrf.mxu3 }
 0x8a5   : > { %v1743_v1 = vadd.f32 %v1742_v63, %v1565_v57  ;;  %v1756_v2 = vadd.f32 %v1755_v0, %v1566_v58 }
 0x8a6   : > { %v1795_v3 = vmul.f32 0.044715, %v1791_v61  ;;  %v1796_v4 = vmul.f32 0.044715, %v1792_v62 }
 0x8a7   : > { %v1785_v5 = vmul.f32 %v1743_v1, %v1743_v1  ;;  %v1786_v6 = vmul.f32 %v1756_v2, %v1756_v2  ;;  %v1770_v7 = vpop.f32.mrf.mxu0  ;;  %v1783_v8 = vpop.f32.mrf.mxu1 }
 0x8a8   : > { %v1799_v9 = vadd.f32 %v1795_v3, %v1769_v55  ;;  %v1800_v10 = vadd.f32 %v1796_v4, %v1782_v56 }
 0x8a9   : > { %v1789_v47 = vmul.f32 %v1785_v5, %v1743_v1  ;;  %v1790_v11 = vmul.f32 %v1786_v6, %v1756_v2 }
 0x8aa   : > { %v1803_v12 = vmul.f32 0.7978846, %v1799_v9  ;;  %v1804_v13 = vmul.f32 0.7978846, %v1800_v10 }
 0x8ab   : > { %v1793_v14 = vmul.f32 0.044715, %v1789_v47  ;;  %v1794_v15 = vmul.f32 0.044715, %v1790_v11 }
 0x8ac   : > { %3079 = vtanh.f32 %v1803_v12  ;;  %v1744_v16 = vpop.f32.mrf.mxu2  ;;  %v1757_v17 = vpop.f32.mrf.mxu3 }
 0x8ad   : > { %3081 = vtanh.f32 %v1804_v13  ;;  %v1797_v18 = vadd.f32 %v1793_v14, %v1743_v1  ;;  %v1798_v37 = vadd.f32 %v1794_v15, %v1756_v2 }
 0x8af   : > { %v1801_v19 = vmul.f32 0.7978846, %v1797_v18  ;;  %v1802_v20 = vmul.f32 0.7978846, %v1798_v37 }
 0x8b1   : > { %3083 = vtanh.f32 %v1801_v19 }
 0x8b2   : > { %v3080_v22 = vpop.eup %3079  ;;  %3085 = vtanh.f32 %v1802_v20 }
 0x8b3   : > { %v3082_v23 = vpop.eup %3081  ;;  %v1811_v24 = vadd.f32 1.0, %v3080_v22 }
 0x8b4   : > { %v1812_v25 = vadd.f32 1.0, %v3082_v23 }
 0x8b5   : > { %v1815_v26 = vmul.f32 0.5, %v1811_v24 }
 0x8b6   : > { %v1816_v27 = vmul.f32 0.5, %v1812_v25 }
 0x8b7   : > { %v3084_v29 = vpop.eup %3083  ;;  %v1819_v30 = vmul.f32 %v1815_v26, %v1769_v55  ;;  %v3064_v55 = vld [vmem:[%s849_s0] ss:$0 sm:$0xff]  ;;  %s3737_s0 = sld [smem:[#allocation22_spill]] (!%p2891_p10) }
 0x8b8   : > { %v3086_v31 = vpop.eup %3085  ;;  %v1820_v32 = vmul.f32 %v1816_v27, %v1782_v56  ;;  %v1809_v33 = vadd.f32 1.0, %v3084_v29 }
 0x8b9   : > { %v1823_v34 = vpack.c.bf16 %v1819_v30, %v1819_v30  ;;  %v1810_v28 = vadd.f32 1.0, %v3086_v31 }
 0x8ba   : > { %v1824_v35 = vpack.c.bf16 %v1820_v32, %v1820_v32  ;;  %v1813_v36 = vmul.f32 0.5, %v1809_v33 }
 0x8bb   : > { %2119 = vmatmul.bf16.vlgmr.msrb.gmra.mxu0 %v1823_v34  ;;  %v1814_v38 = vmul.f32 0.5, %v1810_v28 }
 0x8bc   : > { %2132 = vmatmul.bf16.vlgmr.msrb.gmra.mxu1 %v1824_v35  ;;  %v1817_v39 = vmul.f32 %v1813_v36, %v1743_v1 }
 0x8bd   : > { %v1818_v40 = vmul.f32 %v1814_v38, %v1756_v2 }
 0x8be   : > { %v1821_v41 = vpack.c.bf16 %v1817_v39, %v1817_v39 }
 0x8bf   : > { %v1822_v42 = vpack.c.bf16 %v1818_v40, %v1818_v40 }
 0x8c0   : > { %2093 = vmatmul.bf16.vlgmr.msra.gmra.mxu2 %v1821_v41 }
 0x8c1   : > { %2106 = vmatmul.bf16.vlgmr.msra.gmra.mxu3 %v1822_v42 }
 0x938   : > { %v2120_v43 = vpop.f32.mrf.mxu0 }
 0x939   : > { %v2133_v45 = vpop.f32.mrf.mxu1 }
 0x940   : > { %v2122_v46 = vpop.f32.mrf.mxu0 }
 0x941   : > { %v2135_v49 = vpop.f32.mrf.mxu1 }
 0x943   : > { %v2094_v50 = vpop.f32.mrf.mxu2 }
 0x944   : > { %v2095_v51 = vadd.f32 %v3063_v48, %v2094_v50  ;;  %v2107_v52 = vpop.f32.mrf.mxu3 }
 0x946   : > { %v2108_v53 = vadd.f32 %v2107_v52, %v2095_v51 }
 0x948   : > { %v2121_v54 = vadd.f32 %v2120_v43, %v2108_v53 }
 0x94a   : > { %v2134_v56 = vadd.f32 %v2133_v45, %v2121_v54 }
 0x94b   : > { %v2096_v57 = vpop.f32.mrf.mxu2 }
 0x94c   : > { %v2141_v58 = vmul.f32 %v3064_v55, %v2134_v56  ;;  %v2109_v59 = vpop.f32.mrf.mxu3  ;;  %2147 = sbr.rel (%p2891_p10) target bundleno = 2652 (0xa5c), region = 104 }
 0x94e   : > { %v2142_v60 = vadd.f32 %v2141_v58, %v3510_v21 }
 0x950   : > { %2143 = vst [vmem:[#allocation2] sm:$0xff] %v2142_v60 }
 0x951   : > { %2150 = vadd.xlane.f32.xlu0 %v2142_v60  ;;  %v3087_v9 = vld [vmem:[%s3737_s0] ss:$0 sm:$0xff] }
 0x9c4   : > { %v2151_v61 = vpop.xlane.xlu0 %2150 }
 0x9c5   : > { %v2152_v62 = vmul.f32 %v2151_v61, %v3411_v44 }
 0x9c7   : > { %v2153_v63 = vsub.f32 %v2142_v60, %v2152_v62 }
 0x9c9   : > { %v2154_v0 = vmul.f32 %v2153_v63, %v2153_v63 }
 0x9cb   : > { %2155 = vadd.xlane.f32.xlu0 %v2154_v0 }
 0xa3e   : > { %v2156_v1 = vpop.xlane.xlu0 %2155 }
 0xa3f   : > { %v2157_v2 = vmul.f32 %v2156_v1, %v3411_v44  ;;  %v3088_v44 = vld [vmem:[%s3738_s29] ss:$0 sm:$0xff] }
 0xa41   : > { %v2158_v3 = vadd.f32 1e-06, %v2157_v2 }
 0xa43   : > { %3089 = vrsqrt.f32 %v2158_v3  ;;  %vm2165_vm12 = vweird.f32 %v2158_v3 }
 0xa49   : > { %v3090_v4 = vpop.eup %3089 }
 0xa4a   : > { %v2160_v5 = vmul.f32 %v3090_v4, %v2158_v3  ;;  %vm2166_vm11 = vweird.f32 %v3090_v4 }
 0xa4b   : > { %vm2167_vm13 = vmor %vm2165_vm12, %vm2166_vm11 }
 0xa4c   : > { %v2161_v21 = vmul.f32 %v3090_v4, %v2160_v5 }
 0xa4e   : > { %v2162_v6 = vmul.f32 0.5, %v2161_v21 }
 0xa50   : > { %v2163_v7 = vsub.f32 1.5, %v2162_v6 }
 0xa52   : > { %v2164_v8 = vmul.f32 %v3090_v4, %v2163_v7 }
 0xa54   : > { %v2168_v10 = vsel %vm2167_vm13, %v3090_v4, %v2164_v8 }
 0xa55   : > { %v2169_v47 = vmul.f32 %v2168_v10, %v2153_v63 }
 0xa57   : > { %v2173_v11 = vmul.f32 %v3087_v9, %v2169_v47 }
 0xa59   : > { %v2177_v12 = vadd.f32 %v3088_v44, %v2173_v11 }
 0xa5b   : > { %2178 = vst [vmem:[%s3347_s7] sm:$0xff] %v2177_v12 }
 0xa5c PF: > { %s3739_s27 = sld [smem:[#allocation6_spill]] }
 0xa5d   : > { %s3740_s0 = sld [smem:[#allocation4_spill]] }
 0xa5e   : > { %s3741_s30 = sld [smem:[#allocation5_spill]] }
 0xa5f   : > { %s3742_s20 = sld [smem:[#allocation7_spill]] }
 0xa60   : > { %s3743_s21 = sld [smem:[#allocation8_spill]] }
 0xa62   : > { %s29_s1 = sadd.s32 1, %s3739_s27  }
 0xa63   : > { %p26_p11 = scmp.ge.s32.totalorder %s29_s1, 10  }
 0xa65   :  { %28 = sbr.rel (!%p26_p11) target bundleno = 16 (0x10), region = 176 }

</bundles_post_ra>
